<compile_context>
chip_gen: v7x
topology: tpu7x:2x2x1
jax: 0.10.0
libtpu: 0.0.40
codegen_flags: <defaults>
</compile_context>

<pallas_src>
import jax
import jax.numpy as jnp
from jax.experimental import pallas as pl
from jax.experimental.pallas import tpu as pltpu


def _cdiv(a, b):
    return (a + b - 1) // b


def _round_up(a, m):
    return _cdiv(a, m) * m


def concept_reasoner_kernel(x_ref, wt_ref, o_ref):
    # x_ref : (TB, C, S)  batch tile
    # wt_ref: (S, C)      pre-transposed proj_edge weight (W^T)
    # o_ref : (TB, C, S)  output tile
    TB, C, S = x_ref.shape

    x = x_ref[...].astype(jnp.float32)        # (TB, C, S)
    wt = wt_ref[...].astype(jnp.float32)      # (S, C)

    # adj = tanh(x @ W^T): one flattened MXU matmul over the whole batch tile.
    # (TB, C, S) -> (TB*C, S) only merges leading dims (minor dim unchanged).
    adj = jnp.tanh(
        jnp.dot(x.reshape(TB * C, S), wt, preferred_element_type=jnp.float32)
    ).reshape(TB, C, C)                       # adj[b, c, k]

    # out = x + adj @ x via C broadcast-FMA passes on the VPU
    # (avoids TB tiny per-sample MXU matmuls; tanh above already uses the EUP slot).
    out = x
    for k in range(C):
        out = out + adj[:, :, k:k + 1] * x[:, k:k + 1, :]

    o_ref[...] = jnp.maximum(out, 0.0).astype(o_ref.dtype)


def concept_reasoner(x, weight, cardinality, state_dim, block_batch=256):
    """x: (BS, cardinality*state_dim) (or (..., 1, 1)); weight: (cardinality, state_dim).
    Returns (BS, cardinality*state_dim, 1, 1)."""
    BS = x.shape[0]
    C, S = cardinality, state_dim
    x3 = x.reshape(BS, C, S)
    wt = jnp.transpose(weight)                # (S, C): transpose once, outside the loop

    # ---- choose batch tile TB ---------------------------------------------
    # Big enough to amortize per-step overhead, small enough to double-buffer
    # comfortably within the default scoped VMEM on v5e/v6e/v7x, and (when the
    # batch allows) at least 2 grid steps so v7x megacore gets both cores busy.
    if BS >= 2 * block_batch:
        TB = block_batch
    else:
        TB = min(block_batch, max(8, _round_up(max(_cdiv(BS, 2), 1), 8)))
    n_blocks = _cdiv(BS, TB)
    BSp = n_blocks * TB
    if BSp != BS:
        x3 = jnp.pad(x3, ((0, BSp - BS), (0, 0), (0, 0)))

    cost = pl.CostEstimate(
        flops=4 * BSp * C * C * S,            # adj matmul + adj@x
        transcendentals=BSp * C * C,          # tanh
        bytes_accessed=(2 * BSp * C * S + C * S) * x.dtype.itemsize,
    )

    out = pl.pallas_call(
        concept_reasoner_kernel,
        out_shape=jax.ShapeDtypeStruct((BSp, C, S), x.dtype),
        grid_spec=pltpu.PrefetchScalarGridSpec(
            num_scalar_prefetch=0,
            grid=(n_blocks,),
            in_specs=[
                # TB samples per grid step; (C, S) kept at full extent so this is
                # valid for any cardinality/state_dim.
                pl.BlockSpec((TB, C, S), lambda b: (b, 0, 0)),
                # weight replicated across the grid (full-extent block).
                pl.BlockSpec((S, C), lambda b: (0, 0)),
            ],
            out_specs=pl.BlockSpec((TB, C, S), lambda b: (b, 0, 0)),
        ),
        compiler_params=pltpu.CompilerParams(
            dimension_semantics=("parallel",),
        ),
        cost_estimate=cost,
    )(x3, wt)

    if BSp != BS:
        out = out[:BS]
    # out = out.view(BS, -1, 1, 1)
    return out.reshape(BS, C * S, 1, 1)


def reference(x, weight, cardinality, state_dim):
    # pure-JAX reference of the PyTorch forward
    BS = x.shape[0]
    xv = x.reshape(BS, cardinality, state_dim)
    adj = jnp.tanh(jnp.einsum("bcs,ks->bck", xv, weight))
    out = xv + jnp.einsum("bck,bks->bcs", adj, xv)
    out = jax.nn.relu(out)
    return out.reshape(BS, cardinality * state_dim, 1, 1)


if __name__ == "__main__":
    BS = 32
    cardinality = 8
    state_dim = 32

    key = jax.random.PRNGKey(0)
    kx, kw = jax.random.split(key)

    # deterministic synthetic parameter (nn.Linear(state_dim, cardinality, bias=False))
    bound = 1.0 / jnp.sqrt(jnp.float32(state_dim))
    weight = jax.random.uniform(
        kw, (cardinality, state_dim), jnp.float32, minval=-bound, maxval=bound
    )

    # input: (BS, cardinality*state_dim)
    x = jax.random.normal(kx, (BS, cardinality * state_dim), jnp.float32)

    out = concept_reasoner(x, weight, cardinality, state_dim)
    out = jax.block_until_ready(out)

    ref = reference(x, weight, cardinality, state_dim)
    assert out.shape == (BS, cardinality * state_dim, 1, 1)
    assert jnp.allclose(out, ref, atol=1e-4, rtol=1e-4)

    print("KERNEL_OK")
</pallas_src>

<mosaic_0001>
module attributes {stable_mosaic.version = 11 : i64} {
  func.func @concept_reasoner_kernel(%arg0: i32, %arg1: memref<16x8x32xf32, #tpu.memory_space<vmem>>, %arg2: memref<32x8xf32, #tpu.memory_space<vmem>>, %arg3: memref<16x8x32xf32, #tpu.memory_space<vmem>>) attributes {dimension_semantics = [#tpu.dimension_semantics<parallel>], iteration_bounds = array<i64: 2>, scalar_prefetch = 0 : i64, scratch_operands = 0 : i64, tpu.core_type = #tpu.core_type<tc>, window_params = [{transform_indices = @transform_0, window_bounds = array<i64: 16, 8, 32>}, {pipeline_mode = #tpu.pipeline_mode<synchronous>, transform_indices = @transform_1, window_bounds = array<i64: 32, 8>}, {transform_indices = @transform_2, window_bounds = array<i64: 16, 8, 32>}]} {
    %c0 = arith.constant 0 : index
    %c0_0 = arith.constant 0 : index
    %c0_1 = arith.constant 0 : index
    %0 = vector.load %arg1[%c0, %c0_0, %c0_1] : memref<16x8x32xf32, #tpu.memory_space<vmem>>, vector<16x8x32xf32>
    %c0_2 = arith.constant 0 : index
    %c0_3 = arith.constant 0 : index
    %1 = vector.load %arg2[%c0_2, %c0_3] : memref<32x8xf32, #tpu.memory_space<vmem>>, vector<32x8xf32>
    %2 = vector.shape_cast %0 : vector<16x8x32xf32> to vector<128x32xf32>
    %cst = arith.constant dense<0.000000e+00> : vector<128x8xf32>
    %3 = tpu.matmul %2, %1, %cst {dimension_numbers = #tpu.dot_dimension_numbers<[1], [0], [0], [1], [0, 0, 1, 1], [], []>} : vector<128x32xf32>, vector<32x8xf32>, vector<128x8xf32> -> vector<128x8xf32>
    %4 = math.tanh %3 : vector<128x8xf32>
    %5 = vector.shape_cast %4 : vector<128x8xf32> to vector<16x8x8xf32>
    %6 = vector.extract_strided_slice %5 {offsets = [0, 0, 0], sizes = [16, 8, 1], strides = [1, 1, 1]} : vector<16x8x8xf32> to vector<16x8x1xf32>
    %7 = vector.extract_strided_slice %0 {offsets = [0, 0, 0], sizes = [16, 1, 32], strides = [1, 1, 1]} : vector<16x8x32xf32> to vector<16x1x32xf32>
    %8 = vector.broadcast %6 : vector<16x8x1xf32> to vector<16x8x32xf32>
    %9 = vector.broadcast %7 : vector<16x1x32xf32> to vector<16x8x32xf32>
    %10 = arith.mulf %8, %9 : vector<16x8x32xf32>
    %11 = arith.addf %0, %10 : vector<16x8x32xf32>
    %12 = vector.extract_strided_slice %5 {offsets = [0, 0, 1], sizes = [16, 8, 1], strides = [1, 1, 1]} : vector<16x8x8xf32> to vector<16x8x1xf32>
    %13 = vector.extract_strided_slice %0 {offsets = [0, 1, 0], sizes = [16, 1, 32], strides = [1, 1, 1]} : vector<16x8x32xf32> to vector<16x1x32xf32>
    %14 = vector.broadcast %12 : vector<16x8x1xf32> to vector<16x8x32xf32>
    %15 = vector.broadcast %13 : vector<16x1x32xf32> to vector<16x8x32xf32>
    %16 = arith.mulf %14, %15 : vector<16x8x32xf32>
    %17 = arith.addf %11, %16 : vector<16x8x32xf32>
    %18 = vector.extract_strided_slice %5 {offsets = [0, 0, 2], sizes = [16, 8, 1], strides = [1, 1, 1]} : vector<16x8x8xf32> to vector<16x8x1xf32>
    %19 = vector.extract_strided_slice %0 {offsets = [0, 2, 0], sizes = [16, 1, 32], strides = [1, 1, 1]} : vector<16x8x32xf32> to vector<16x1x32xf32>
    %20 = vector.broadcast %18 : vector<16x8x1xf32> to vector<16x8x32xf32>
    %21 = vector.broadcast %19 : vector<16x1x32xf32> to vector<16x8x32xf32>
    %22 = arith.mulf %20, %21 : vector<16x8x32xf32>
    %23 = arith.addf %17, %22 : vector<16x8x32xf32>
    %24 = vector.extract_strided_slice %5 {offsets = [0, 0, 3], sizes = [16, 8, 1], strides = [1, 1, 1]} : vector<16x8x8xf32> to vector<16x8x1xf32>
    %25 = vector.extract_strided_slice %0 {offsets = [0, 3, 0], sizes = [16, 1, 32], strides = [1, 1, 1]} : vector<16x8x32xf32> to vector<16x1x32xf32>
    %26 = vector.broadcast %24 : vector<16x8x1xf32> to vector<16x8x32xf32>
    %27 = vector.broadcast %25 : vector<16x1x32xf32> to vector<16x8x32xf32>
    %28 = arith.mulf %26, %27 : vector<16x8x32xf32>
    %29 = arith.addf %23, %28 : vector<16x8x32xf32>
    %30 = vector.extract_strided_slice %5 {offsets = [0, 0, 4], sizes = [16, 8, 1], strides = [1, 1, 1]} : vector<16x8x8xf32> to vector<16x8x1xf32>
    %31 = vector.extract_strided_slice %0 {offsets = [0, 4, 0], sizes = [16, 1, 32], strides = [1, 1, 1]} : vector<16x8x32xf32> to vector<16x1x32xf32>
    %32 = vector.broadcast %30 : vector<16x8x1xf32> to vector<16x8x32xf32>
    %33 = vector.broadcast %31 : vector<16x1x32xf32> to vector<16x8x32xf32>
    %34 = arith.mulf %32, %33 : vector<16x8x32xf32>
    %35 = arith.addf %29, %34 : vector<16x8x32xf32>
    %36 = vector.extract_strided_slice %5 {offsets = [0, 0, 5], sizes = [16, 8, 1], strides = [1, 1, 1]} : vector<16x8x8xf32> to vector<16x8x1xf32>
    %37 = vector.extract_strided_slice %0 {offsets = [0, 5, 0], sizes = [16, 1, 32], strides = [1, 1, 1]} : vector<16x8x32xf32> to vector<16x1x32xf32>
    %38 = vector.broadcast %36 : vector<16x8x1xf32> to vector<16x8x32xf32>
    %39 = vector.broadcast %37 : vector<16x1x32xf32> to vector<16x8x32xf32>
    %40 = arith.mulf %38, %39 : vector<16x8x32xf32>
    %41 = arith.addf %35, %40 : vector<16x8x32xf32>
    %42 = vector.extract_strided_slice %5 {offsets = [0, 0, 6], sizes = [16, 8, 1], strides = [1, 1, 1]} : vector<16x8x8xf32> to vector<16x8x1xf32>
    %43 = vector.extract_strided_slice %0 {offsets = [0, 6, 0], sizes = [16, 1, 32], strides = [1, 1, 1]} : vector<16x8x32xf32> to vector<16x1x32xf32>
    %44 = vector.broadcast %42 : vector<16x8x1xf32> to vector<16x8x32xf32>
    %45 = vector.broadcast %43 : vector<16x1x32xf32> to vector<16x8x32xf32>
    %46 = arith.mulf %44, %45 : vector<16x8x32xf32>
    %47 = arith.addf %41, %46 : vector<16x8x32xf32>
    %48 = vector.extract_strided_slice %5 {offsets = [0, 0, 7], sizes = [16, 8, 1], strides = [1, 1, 1]} : vector<16x8x8xf32> to vector<16x8x1xf32>
    %49 = vector.extract_strided_slice %0 {offsets = [0, 7, 0], sizes = [16, 1, 32], strides = [1, 1, 1]} : vector<16x8x32xf32> to vector<16x1x32xf32>
    %50 = vector.broadcast %48 : vector<16x8x1xf32> to vector<16x8x32xf32>
    %51 = vector.broadcast %49 : vector<16x1x32xf32> to vector<16x8x32xf32>
    %52 = arith.mulf %50, %51 : vector<16x8x32xf32>
    %53 = arith.addf %47, %52 : vector<16x8x32xf32>
    %cst_4 = arith.constant 0.000000e+00 : f32
    %54 = vector.broadcast %cst_4 : f32 to vector<16x8x32xf32>
    %55 = arith.maximumf %53, %54 : vector<16x8x32xf32>
    %c0_5 = arith.constant 0 : index
    %c0_6 = arith.constant 0 : index
    %c0_7 = arith.constant 0 : index
    %56 = vector.load %arg3[%c0_5, %c0_6, %c0_7] : memref<16x8x32xf32, #tpu.memory_space<vmem>>, vector<16x8x32xf32>
    tpu.vector_store %arg3[%c0_5, %c0_6, %c0_7], %55 {strides = array<i32>} : memref<16x8x32xf32, #tpu.memory_space<vmem>>, vector<16x8x32xf32>,
    return
  }
  func.func @transform_0(%arg0: i32) -> (i32, i32, i32) {
    %c0_i32 = arith.constant 0 : i32
    %c0_i32_0 = arith.constant 0 : i32
    %c0_i32_1 = arith.constant 0 : i32
    return %arg0, %c0_i32, %c0_i32_0 : i32, i32, i32
  }
  func.func @transform_1(%arg0: i32) -> (i32, i32) {
    %c0_i32 = arith.constant 0 : i32
    %c0_i32_0 = arith.constant 0 : i32
    %c0_i32_1 = arith.constant 0 : i32
    return %c0_i32, %c0_i32_0 : i32, i32
  }
  func.func @transform_2(%arg0: i32) -> (i32, i32, i32) {
    %c0_i32 = arith.constant 0 : i32
    %c0_i32_0 = arith.constant 0 : i32
    %c0_i32_1 = arith.constant 0 : i32
    return %arg0, %c0_i32, %c0_i32_0 : i32, i32, i32
  }
}

</mosaic_0001>

<bundles_post_ra>
// kernel: tpu_custom_call.1
= control target key start
LH: loop header
LB: loop body
LE: loop exit
PB: predicated region body
PF: predicated region fallthrough
CT: control target
= control target key end

     0   :  { %7 = vsyncpa [#allocation3], 0  ;;  %s3108_s0 = inlined_call_operand.hbm [shape: f32[32,8,32], index: 0, kind: input, shape index: {}]   ;;  %s3109_s1 = inlined_call_operand.vmem [shape: f32[32,8], index: 1, kind: input, shape index: {}]   ;;  %s3110_s2 = inlined_call_operand.hbm [shape: f32[32,8,32], index: 2, kind: output, shape index: {}]  }
   0x1   :  { %9 = vsyncpa [#allocation3 + $0x1], 0 }
   0x2   :  { %10 = vsyncpa [#allocation4], 0 }
   0x3   :  { %12 = vsyncpa [#allocation4 + $0x1], 0  ;;  %s2217_s9 = smov 0   ;;  %s2219_s10 = smov 0  }
   0x4   :  { %s2221_s11 = smov 0   ;;  %s2223_s12 = smov 0  }
   0x5 LB: > { %s2238_s13 = sadd.s32 4294967295, %s2186_s12   ;;  %s1809_s14 = sadd.s32 4294967294, %s2186_s12   ;;  %s2186_s12 = sphi %s2223_s12, %s3123_s12   ;;  %s2182_s11 = sphi %s2221_s11, %s3122_s11   ;;  %s2178_s10 = sphi %s2219_s10, %s3121_s10   ;;  %s2174_s9 = sphi %s2217_s9, %s3120_s9  }
   0x6   : > { %s2242_s15 = sadd.s32 1, %s2186_s12   ;;  %s25_s16 = sadd.s32 1, %s2182_s11 }
   0x7   : > { %s22_s17 = ssub.s32 %s2186_s12, %s2242_s15  ;;  %p32_p0 = scmp.ne.s32.totalorder %s2182_s11, %s2178_s10 }
   0x8   : > { %p23_p1 = scmp.eq.s32.totalorder %s22_s17, 0  ;;  %p33_p2 = scmp.eq.s32.totalorder %s2186_s12, 0 }
   0x9   : > { %p38_p3 = scmp.ne.s32.totalorder %s2178_s10, %s2174_s9  ;;  %p39_p4 = scmp.eq.s32.totalorder %s2238_s13, 0 }
   0xa   : > { %s2254_s18 = scalar_select %p23_p1, %s2182_s11, %s25_s16  }
   0xb   : > { %p2256_p5 = por %p33_p2, %p32_p0  ;;  %p2260_p6 = por %p39_p4, %p38_p3 }
   0xc   : > { %p83_p7 = scmp.eq.s32.totalorder %s2238_s13, 1  ;;  %p89_p8 = scmp.eq.s32.totalorder %s1809_s14, 1 }
   0xd   : > { %p1917_p10 = scmp.lt.s32.totalorder %s2186_s12, 2  ;;  %s112_s23 = sand.u32 1, %s2182_s11  }
   0xe   : > { %p2267_p11 = por %p83_p7, %p32_p0  ;;  %p2271_p12 = por %p89_p8, %p38_p3 }
   0xf   : > { %s1839_s24 = sshll.u32 %s2186_s12, 11  ;;  %s1812_s25 = sshll.u32 %s112_s23, 7 }
  0x10   : > { %s3114_s21 = scalar_select %p2267_p11, 1, 0 }
  0x11   : > { %s3115_s22 = scalar_select %p2271_p12, 1, 0 }
  0x12   : > { %s2280_s28 = scalar_lea.hbm %s3108_s0, %s1839_s24  ;;  %s116_s29 = scalar_lea.vmem [#allocation2], %s1812_s25 }
  0x13   : > { %s123_s30 = sshll.u32 %s116_s29, 4  ;;  %p2284_p13 = pnand %p1917_p10, %p2256_p5  ;;  %s2288_s30 = int_to_ptr.vmem [resolvable:$true] %s123_s30 }
  0x14   : > { %s2290_s4 = scalar_lea.sflag [#allocation3], %s112_s23  ;;  %s2090_s5 = scalar_lea.hbm %s2280_s28, 2048 }
  0x15   : > { %p2091_p0 = scmp.ne.s32.totalorder %s2280_s28, %s2090_s5  ;;  %p2092_p1 = pneg %p2284_p13 }
  0x16   : > { %s2095_s8 = scalar_lea.hbm %s3108_s0, 4096  ;;  %p2096_p4 = scmp.lt.u32.totalorder %s2280_s28, %s3108_s0 }
  0x17   : > { %p2093_p2 = pnand %p2092_p1, %p2091_p0  ;;  %p2097_p5 = scmp.lt.u32.totalorder %s2095_s8, %s2090_s5 }
  0x18   : > { %p2099_p8 = scmp.lt.u32.totalorder %s2090_s5, %s2280_s28 }
  0x19   : > { %p2094_p3 = pneg %p2093_p2  ;;  %p2098_p7 = por %p2097_p5, %p2096_p4 }
  0x1b   : > { %p2100_p10 = por %p2099_p8, %p2098_p7 }
  0x1d   : > { %p2101_p9 = pnand %p2100_p10, %p2094_p3 }
  0x1f   : > { %2104 = shalt.err (!%p2101_p9)
}
  0x20   : > { %s2105_s17 = scalar_lea.vmem %s2288_s30, 2048  ;;  %s2188_s19 = smov [#allocation2]  }
  0x21   : > { %p2106_p0 = scmp.ne.s32.totalorder %s2288_s30, %s2105_s17  ;;  %s2110_s23 = sshll.u32 %s2188_s19, 4  ;;  %s2111_s23 = int_to_ptr.vmem [resolvable:$false] %s2110_s23 }
  0x22   : > { %s2112_s24 = scalar_lea.vmem %s2111_s23, 4096  ;;  %p2113_p11 = scmp.lt.s32.totalorder %s2288_s30, %s2111_s23 }
  0x23   : > { %p2108_p2 = pnand %p2106_p0, %p2092_p1  ;;  %p2114_p4 = scmp.lt.s32.totalorder %s2112_s24, %s2105_s17 }
  0x25   : > { %p2109_p12 = pneg %p2108_p2  ;;  %p2115_p5 = por %p2114_p4, %p2113_p11 }
  0x27   : > { %p2116_p7 = pnand %p2115_p5, %p2109_p12 }
  0x29   : > { %2119 = shalt.err (!%p2116_p7)
}
  0x2a   : > { %s2189_s25 = smov 128   ;;  %s2190_s26 = smov 8  }
  0x2b   : > { %1912 = dma.hbm_to_vmem [thread:$0]  (!%p2284_p13), %s2280_s28, 2048, %s2288_s30, %s2290_s4, %s2189_s25, %s2189_s25, %s2190_s26  }
  0x2c   : > { %p1815_p9 = scmp.ge.s32.totalorder %s2186_s12, 1  ;;  %p131_p1 = scmp.lt.s32.totalorder %s2186_s12, 3 }
  0x2e   : > { %p132_p3 = pnand %p1815_p9, %p131_p1 }
  0x2f   : > { %s2321_s27 = sand.u32 (!%p132_p3), 1, %s2178_s10  }
  0x30   : > { %135 = sbr.rel (%p132_p3) target bundleno = 746 (0x2ea), region = 28  ;;  %s1816_s29 = sshll.u32 (!%p132_p3), %s2321_s27, 7 }
  0x31   : > { %s138_s5 = scalar_lea.sflag (!%p132_p3), [#allocation3], %s2321_s27  ;;  %s2327_s6 = scalar_lea.vmem (!%p132_p3), [#allocation2], %s1816_s29 }
  0x37   : > { %2165 = dma.done.wait (%p2260_p6), %s138_s5, 2048  }
  0x38   : > { %2167 = vsyncadd (%p2260_p6), %s138_s5, 4294965248  ;;  %vm184_vm0 = vcmask 261120   ;;  %v180_v0 = vld [vmem:[%s3109_s1] sm:$0xff]  ;;  %v181_v1 = vld [vmem:[%s3109_s1 + $0x8] sm:$0xff]  ;;  %v2191_v22 = vmov 0   ;;  %v2192_v35 = vmov 1   ;;  %v474_v58 = vlaneseq }
  0x39   : > { %v182_v2 = vld [vmem:[%s3109_s1 + $0x10] sm:$0xff]  ;;  %v1893_v3 = vpack.c.bf16 %v181_v1, %v180_v0  ;;  %v183_v4 = vld [vmem:[%s3109_s1 + $0x18] sm:$0xff]  ;;  %v2346_v5 = vld [vmem:[%s2327_s6] sm:$0xff]  ;;  %1964 = vset.pattern.permute.xlu1 %v2191_v22  ;;  %1963 = vset.pattern.permute.xlu0 %v2191_v22  ;;  %v2193_v36 = vmov 2   ;;  %v2194_v37 = vmov 3   ;;  %v2195_v39 = vmov 4  }
  0x3a   : > { %v2349_v6 = vld [vmem:[%s2327_s6 + $0x40] sm:$0xff]  ;;  %v1897_v7 = vpack.c.bf16 %v183_v4, %v182_v2  ;;  %1869 = vmatprep.mubr.msk.f32.mxu0 %vm184_vm0, %v2346_v5  ;;  %v2356_v8 = vld [vmem:[%s2327_s6 + $0x8] sm:$0xff]  ;;  %v2360_v10 = vld [vmem:[%s2327_s6 + $0x10] sm:$0xff]  ;;  %v2196_v41 = vmov 5   ;;  %v2197_v42 = vmov 6   ;;  %v2198_v44 = vmov 7  }
  0x3b   : > { %1881 = vmatprep.mubr.msk.f32.mxu1 %vm184_vm0, %v2349_v6  ;;  %1894 = vmatprep.subr.bf16.mxu0 %v1893_v3  ;;  %v173_v9 = vld [vmem:[%s2327_s6 + $0x48] sm:$0xff]  ;;  %v2363_v11 = vld [vmem:[%s2327_s6 + $0x50] sm:$0xff]  ;;  %v2371_v12 = vld [vmem:[%s2327_s6 + $0x18] sm:$0xff]  ;;  %v475_v61 = vshrl.u32 %v474_v58, 7  ;;  %s2591_s16 = scalar_lea.vmem [#allocation5], %s1816_s29  ;;  %s1840_s17 = sshll.u32 %s2238_s13, 11 }
  0x3c   : > { %1901 = vmatprep.subr.bf16.mxu1 %v1893_v3  ;;  %1896 = vmatpush3.bf16.msra.mxu0 %v1893_v3  ;;  %v2376_v13 = vld [vmem:[%s2327_s6 + $0x58] sm:$0xff]  ;;  %v168_v14 = vld [vmem:[%s2327_s6 + $0x20] sm:$0xff]  ;;  %v169_v16 = vld [vmem:[%s2327_s6 + $0x28] sm:$0xff]  ;;  %s1736_s19 = sshll.u32 %s2591_s16, 4  ;;  %s3060_s25 = scalar_lea.hbm %s3110_s2, %s1840_s17  ;;  %s3062_s19 = int_to_ptr.vmem [resolvable:$true] %s1736_s19 }
  0x3d   : > { %1903 = vmatpush3.bf16.msra.mxu1 %v1893_v3  ;;  %1898 = vmatprep.subr.bf16.mxu0 %v1897_v7  ;;  %v176_v15 = vld [vmem:[%s2327_s6 + $0x60] sm:$0xff]  ;;  %v177_v17 = vld [vmem:[%s2327_s6 + $0x68] sm:$0xff]  ;;  %v170_v18 = vld [vmem:[%s2327_s6 + $0x30] sm:$0xff]  ;;  %v2521_v0 = vsub.s32 0, %v475_v61  ;;  %v2527_v2 = vsub.s32 1, %v475_v61  ;;  %s1723_s26 = scalar_lea.sflag [#allocation4], %s2321_s27 }
  0x3e   : > { %1902 = vmatprep.subr.bf16.mxu1 %v1897_v7  ;;  %v178_v19 = vld [vmem:[%s2327_s6 + $0x70] sm:$0xff]  ;;  %v171_v20 = vld [vmem:[%s2327_s6 + $0x38] sm:$0xff]  ;;  %s2120_s29 = scalar_lea.vmem %s3062_s19, 2048  ;;  %p3117_p11 = scmp.ne.s32.totalorder %s3114_s21, 0 }
  0x3f   : > { %v179_v21 = vld [vmem:[%s2327_s6 + $0x78] sm:$0xff]  ;;  %v481_v1 = vrot.slane %v2356_v8, %v2521_v0  ;;  %p2121_p6 = scmp.ne.s32.totalorder %s3062_s19, %s2120_s29  ;;  %s2199_s13 = smov [#allocation5]  }
  0x40   : > { %1900 = vmatpush3.bf16.msra.mxu0 %v1897_v7  ;;  %s2124_s5 = sshll.u32 %s2199_s13, 4  ;;  %s2125_s5 = int_to_ptr.vmem [resolvable:$false] %s2124_s5 }
  0x41   : > { %1904 = vmatpush3.bf16.msra.mxu1 %v1897_v7  ;;  %v2531_v7 = vsub.s32 2, %v475_v61  ;;  %p2122_p12 = pnand %p2121_p6, %p3117_p11  ;;  %p2127_p8 = scmp.lt.s32.totalorder %s3062_s19, %s2125_s5 }
  0x43   : > { %1870 = vmatmul.mubr.msk.f32.vlgmr.msra.gmra.mrb[0].mxu0 %vm184_vm0, %v2356_v8  ;;  %p2123_p13 = pneg %p2122_p12 }
  0x44   : > { %1882 = vmatmul.mubr.msk.f32.vlgmr.msra.gmra.mrb[0].mxu1 %vm184_vm0, %v173_v9  ;;  %1872 = vmatprep.mubr.msk.f32.mxu0 %vm184_vm0, %v2360_v10 }
  0x45   : > { %1884 = vmatprep.mubr.msk.f32.mxu1 %vm184_vm0, %v2363_v11 }
  0x47   : > { %1873 = vmatmul.mubr.msk.f32.gmra.mrb[2].mxu0 %vm184_vm0, %v2371_v12 }
  0x48   : > { %1885 = vmatmul.mubr.msk.f32.gmra.mrb[2].mxu1 %vm184_vm0, %v2376_v13  ;;  %1875 = vmatprep.mubr.msk.f32.mxu0 %vm184_vm0, %v168_v14  ;;  %v641_v14 = vrot.slane %v2356_v8, %v2527_v2 }
  0x49   : > { %1887 = vmatprep.mubr.msk.f32.mxu1 %vm184_vm0, %v176_v15  ;;  %v2538_v15 = vsub.s32 3, %v475_v61 }
  0x4b   : > { %1876 = vmatmul.mubr.msk.f32.gmra.mrb[4].mxu0 %vm184_vm0, %v169_v16 }
  0x4c   : > { %1888 = vmatmul.mubr.msk.f32.gmra.mrb[4].mxu1 %vm184_vm0, %v177_v17  ;;  %1878 = vmatprep.mubr.msk.f32.mxu0 %vm184_vm0, %v170_v18  ;;  %v801_v17 = vrot.slane %v2356_v8, %v2531_v7  ;;  %v2542_v18 = vsub.s32 4, %v475_v61 }
  0x4d   : > { %1890 = vmatprep.mubr.msk.f32.mxu1 %vm184_vm0, %v178_v19 }
  0x4f   : > { %1879 = vmatmul.mubr.msk.f32.gmra.mrb[6].mxu0 %vm184_vm0, %v171_v20 }
  0x50   : > { %1891 = vmatmul.mubr.msk.f32.gmra.mrb[6].mxu1 %vm184_vm0, %v179_v21 }
 0x116   : > { %v1871_v23 = vpop.f32.mrb[0].mxu0 }
 0x117   : > { %v1883_v24 = vpop.f32.mrb[0].mxu1  ;;  %2046 = vtanh.f32 %v1871_v23  ;;  %v299_v26 = vpop.f32.mrb[1].mxu0  ;;  %v961_v23 = vrot.slane %v2356_v8, %v2538_v15 }
 0x118   : > { %v339_v25 = vpop.f32.mrb[1].mxu1  ;;  %2048 = vtanh.f32 %v1883_v24  ;;  %v2552_v24 = vsub.s32 5, %v475_v61 }
 0x119   : > { %2050 = vtanh.f32 %v299_v26  ;;  %v1121_v26 = vrot.slane %v2356_v8, %v2542_v18 }
 0x11a   : > { %v2400_v27 = vpop.f32.mrb[2].mxu0  ;;  %2052 = vtanh.f32 %v339_v25 }
 0x11b   : > { %v2402_v28 = vpop.f32.mrb[2].mxu1  ;;  %v2404_v29 = vpop.f32.mrb[3].mxu0  ;;  %2054 = vtanh.f32 %v2400_v27 }
 0x11c   : > { %v2406_v30 = vpop.f32.mrb[3].mxu1  ;;  %2056 = vtanh.f32 %v2402_v28  ;;  %v2559_v28 = vsub.s32 6, %v475_v61 }
 0x11d   : > { %2058 = vtanh.f32 %v2406_v30 }
 0x11e   : > { %v2408_v31 = vpop.f32.mrb[4].mxu0  ;;  %2060 = vtanh.f32 %v2404_v29 }
 0x11f   : > { %v2410_v32 = vpop.f32.mrb[4].mxu1  ;;  %v2424_v38 = vpop.f32.mrb[5].mxu0  ;;  %2062 = vtanh.f32 %v2408_v31 }
 0x120   : > { %v2429_v40 = vpop.f32.mrb[5].mxu1  ;;  %2064 = vtanh.f32 %v2410_v32  ;;  %v1281_v32 = vrot.slane %v2356_v8, %v2552_v24 }
 0x121   : > { %v2047_v33 = vpop.eup %2046  ;;  %2066 = vtanh.f32 %v2424_v38 }
 0x122   : > { %v2412_v34 = vpop.eup %2048  ;;  %401 = vperm.xlu0 %1963, %v2047_v33   ;;  %v2448_v46 = vpop.f32.mrb[6].mxu0  ;;  %2068 = vtanh.f32 %v2429_v40 }
 0x123   : > { %441 = vperm.xlu1 %1964, %v2412_v34   ;;  %v2051_v43 = vpop.eup %2050  ;;  %v2452_v47 = vpop.f32.mrb[6].mxu1  ;;  %2070 = vtanh.f32 %v2448_v46  ;;  %v1277_v46 = vrot.slane %v2346_v5, %v2552_v24 }
 0x124   : > { %v2053_v45 = vpop.eup %2052  ;;  %v2467_v50 = vpop.f32.mrb[7].mxu0  ;;  %2072 = vtanh.f32 %v2452_v47 }
 0x125   : > { %v2055_v48 = vpop.eup %2054  ;;  %v2470_v51 = vpop.f32.mrb[7].mxu1  ;;  %2074 = vtanh.f32 %v2467_v50 }
 0x126   : > { %1966 = vset.pattern.permute.xlu0 %v2192_v35  ;;  %v2460_v49 = vpop.eup %2056  ;;  %2076 = vtanh.f32 %v2470_v51  ;;  %v1449_v51 = vrot.slane %v2371_v12, %v2559_v28 }
 0x127   : > { %1965 = vset.pattern.permute.xlu1 %v2192_v35  ;;  %607 = vperm.xlu0 %1966, %v2412_v34   ;;  %v2482_v52 = vpop.eup %2058 }
 0x128   : > { %575 = vperm.xlu1 %1965, %v2047_v33   ;;  %v2485_v53 = vpop.eup %2060 }
 0x129   : > { %v2503_v55 = vpop.eup %2062 }
 0x12a   : > { %v2511_v57 = vpop.eup %2064 }
 0x12b   : > { %1967 = vset.pattern.permute.xlu0 %v2193_v36 }
 0x12c   : > { %1968 = vset.pattern.permute.xlu1 %v2193_v36  ;;  %735 = vperm.xlu0 %1967, %v2047_v33  }
 0x12d   : > { %767 = vperm.xlu1 %1968, %v2412_v34  }
 0x130   : > { %1970 = vset.pattern.permute.xlu0 %v2194_v37 }
 0x131   : > { %1969 = vset.pattern.permute.xlu1 %v2194_v37  ;;  %927 = vperm.xlu0 %1970, %v2412_v34  }
 0x132   : > { %895 = vperm.xlu1 %1969, %v2047_v33  }
 0x135   : > { %1971 = vset.pattern.permute.xlu0 %v2195_v39 }
 0x136   : > { %1972 = vset.pattern.permute.xlu1 %v2195_v39  ;;  %1055 = vperm.xlu0 %1971, %v2047_v33  }
 0x137   : > { %1087 = vperm.xlu1 %1972, %v2412_v34  }
 0x13a   : > { %1974 = vset.pattern.permute.xlu0 %v2196_v41 }
 0x13b   : > { %1973 = vset.pattern.permute.xlu1 %v2196_v41  ;;  %1247 = vperm.xlu0 %1974, %v2412_v34  }
 0x13c   : > { %1215 = vperm.xlu1 %1973, %v2047_v33  }
 0x13f   : > { %1975 = vset.pattern.permute.xlu0 %v2197_v42 }
 0x140   : > { %1976 = vset.pattern.permute.xlu1 %v2197_v42  ;;  %1375 = vperm.xlu0 %1975, %v2047_v33  }
 0x141   : > { %1407 = vperm.xlu1 %1976, %v2412_v34  }
 0x144   : > { %1978 = vset.pattern.permute.xlu0 %v2191_v22 }
 0x145   : > { %1977 = vset.pattern.permute.xlu1 %v2198_v44  ;;  %396 = vperm.xlu0 %1978, %v2051_v43  }
 0x146   : > { %1535 = vperm.xlu1 %1977, %v2047_v33  }
 0x149   : > { %436 = vperm.xlu0 %1978, %v2053_v45  }
 0x14a   : > { %1980 = vset.pattern.permute.xlu1 %v2192_v35 }
 0x14b   : > { %603 = vperm.xlu1 %1980, %v2053_v45  }
 0x14d   : > { %1979 = vset.pattern.permute.xlu0 %v2192_v35 }
 0x14e   : > { %571 = vperm.xlu0 %1979, %v2051_v43  }
 0x14f   : > { %1981 = vset.pattern.permute.xlu1 %v2193_v36 }
 0x150   : > { %731 = vperm.xlu1 %1981, %v2051_v43  }
 0x152   : > { %1982 = vset.pattern.permute.xlu0 %v2193_v36 }
 0x153   : > { %763 = vperm.xlu0 %1982, %v2053_v45  }
 0x154   : > { %1984 = vset.pattern.permute.xlu1 %v2194_v37 }
 0x155   : > { %923 = vperm.xlu1 %1984, %v2053_v45  }
 0x157   : > { %1983 = vset.pattern.permute.xlu0 %v2194_v37 }
 0x158   : > { %891 = vperm.xlu0 %1983, %v2051_v43  }
 0x159   : > { %1985 = vset.pattern.permute.xlu1 %v2195_v39 }
 0x15a   : > { %1051 = vperm.xlu1 %1985, %v2051_v43  }
 0x15c   : > { %1986 = vset.pattern.permute.xlu0 %v2195_v39 }
 0x15d   : > { %1083 = vperm.xlu0 %1986, %v2053_v45  }
 0x15e   : > { %1988 = vset.pattern.permute.xlu1 %v2196_v41 }
 0x15f   : > { %1243 = vperm.xlu1 %1988, %v2053_v45  }
 0x161   : > { %1987 = vset.pattern.permute.xlu0 %v2196_v41 }
 0x162   : > { %1211 = vperm.xlu0 %1987, %v2051_v43  }
 0x163   : > { %1989 = vset.pattern.permute.xlu1 %v2197_v42 }
 0x164   : > { %1371 = vperm.xlu1 %1989, %v2051_v43  }
 0x166   : > { %1990 = vset.pattern.permute.xlu0 %v2197_v42 }
 0x167   : > { %1403 = vperm.xlu0 %1990, %v2053_v45  }
 0x168   : > { %1992 = vset.pattern.permute.xlu1 %v2198_v44 }
 0x169   : > { %1563 = vperm.xlu1 %1992, %v2053_v45   ;;  %v2569_v45 = vsub.s32 7, %v475_v61  ;;  %v2579_v61 = vpop.eup %2066 }
 0x16b   : > { %1991 = vset.pattern.permute.xlu0 %v2198_v44  ;;  %v1629_v47 = vrot.slane %v2349_v6, %v2569_v45 }
 0x16c   : > { %1531 = vperm.xlu0 %1991, %v2051_v43   ;;  %v1441_v43 = vrot.slane %v2356_v8, %v2559_v28 }
 0x16d   : > { %1993 = vset.pattern.permute.xlu1 %v2191_v22 }
 0x16e   : > { %411 = vperm.xlu1 %1993, %v2055_v48  }
 0x170   : > { %1994 = vset.pattern.permute.xlu0 %v2192_v35 }
 0x171   : > { %583 = vperm.xlu0 %1994, %v2055_v48  }
 0x172   : > { %451 = vperm.xlu1 %1993, %v2460_v49  }
 0x175   : > { %615 = vperm.xlu0 %1994, %v2460_v49  }
 0x176   : > { %1995 = vset.pattern.permute.xlu1 %v2193_v36 }
 0x177   : > { %743 = vperm.xlu1 %1995, %v2055_v48  }
 0x179   : > { %1996 = vset.pattern.permute.xlu0 %v2194_v37 }
 0x17a   : > { %903 = vperm.xlu0 %1996, %v2055_v48  }
 0x17b   : > { %775 = vperm.xlu1 %1995, %v2460_v49  }
 0x17e   : > { %935 = vperm.xlu0 %1996, %v2460_v49  }
 0x17f   : > { %1997 = vset.pattern.permute.xlu1 %v2195_v39 }
 0x180   : > { %1063 = vperm.xlu1 %1997, %v2055_v48  }
 0x182   : > { %1998 = vset.pattern.permute.xlu0 %v2196_v41 }
 0x183   : > { %1223 = vperm.xlu0 %1998, %v2055_v48  }
 0x184   : > { %1095 = vperm.xlu1 %1997, %v2460_v49  }
 0x187   : > { %1255 = vperm.xlu0 %1998, %v2460_v49  }
 0x188   : > { %1999 = vset.pattern.permute.xlu1 %v2197_v42 }
 0x189   : > { %1383 = vperm.xlu1 %1999, %v2055_v48  }
 0x18b   : > { %2000 = vset.pattern.permute.xlu0 %v2198_v44 }
 0x18c   : > { %1543 = vperm.xlu0 %2000, %v2055_v48  }
 0x18d   : > { %1415 = vperm.xlu1 %1999, %v2460_v49  }
 0x190   : > { %2002 = vset.pattern.permute.xlu0 %v2191_v22 }
 0x191   : > { %2001 = vset.pattern.permute.xlu1 %v2191_v22  ;;  %446 = vperm.xlu0 %2002, %v2482_v52  }
 0x192   : > { %406 = vperm.xlu1 %2001, %v2485_v53  }
 0x195   : > { %2005 = vset.pattern.permute.xlu0 %v2193_v36 }
 0x196   : > { %2003 = vset.pattern.permute.xlu1 %v2192_v35  ;;  %771 = vperm.xlu0 %2005, %v2482_v52  }
 0x197   : > { %579 = vperm.xlu1 %2003, %v2485_v53  }
 0x19a   : > { %2008 = vset.pattern.permute.xlu0 %v2195_v39 }
 0x19b   : > { %611 = vperm.xlu1 %2003, %v2482_v52   ;;  %1091 = vperm.xlu0 %2008, %v2482_v52  }
 0x19f   : > { %2004 = vset.pattern.permute.xlu1 %v2193_v36  ;;  %2011 = vset.pattern.permute.xlu0 %v2197_v42 }
 0x1a0   : > { %739 = vperm.xlu1 %2004, %v2485_v53   ;;  %1411 = vperm.xlu0 %2011, %v2482_v52  }
 0x1a1   : > { %v402_v54 = vpop.permute.xlu0 %401 }
 0x1a2   : > { %v2505_v56 = vpop.permute.xlu1 %441  ;;  %v539_v9 = vmul.f32 %v481_v1, %v402_v54  ;;  %v1601_v1 = vrot.slane %v2356_v8, %v2569_v45 }
 0x1a4   : > { %2006 = vset.pattern.permute.xlu1 %v2194_v37  ;;  %2014 = vset.pattern.permute.xlu0 %v2192_v35  ;;  %v555_v20 = vadd.f32 %v539_v9, %v2356_v8 }
 0x1a5   : > { %899 = vperm.xlu1 %2006, %v2485_v53   ;;  %591 = vperm.xlu0 %2014, %v2503_v55  }
 0x1a6   : > { %v2513_v59 = vpop.permute.xlu0 %607 }
 0x1a7   : > { %v576_v60 = vpop.permute.xlu1 %575 }
 0x1a8   : > { %v699_v21 = vmul.f32 %v641_v14, %v576_v60 }
 0x1a9   : > { %931 = vperm.xlu1 %2006, %v2482_v52   ;;  %623 = vperm.xlu0 %2014, %v2511_v57  }
 0x1aa   : > { %v715_v30 = vadd.f32 %v699_v21, %v555_v20 }
 0x1ab   : > { %v736_v62 = vpop.permute.xlu0 %735 }
 0x1ac   : > { %v2517_v63 = vpop.permute.xlu1 %767  ;;  %v859_v25 = vmul.f32 %v801_v17, %v736_v62 }
 0x1ad   : > { %2007 = vset.pattern.permute.xlu1 %v2195_v39  ;;  %2016 = vset.pattern.permute.xlu0 %v2194_v37 }
 0x1ae   : > { %1059 = vperm.xlu1 %2007, %v2485_v53   ;;  %911 = vperm.xlu0 %2016, %v2503_v55   ;;  %v875_v33 = vadd.f32 %v859_v25, %v715_v30  ;;  %v477_v30 = vrot.slane %v2346_v5, %v2521_v0 }
 0x1b0   : > { %v2529_v3 = vpop.permute.xlu0 %927 }
 0x1b1   : > { %v896_v4 = vpop.permute.xlu1 %895 }
 0x1b2   : > { %2009 = vset.pattern.permute.xlu1 %v2196_v41  ;;  %943 = vperm.xlu0 %2016, %v2511_v57   ;;  %v1019_v31 = vmul.f32 %v961_v23, %v896_v4 }
 0x1b3   : > { %1219 = vperm.xlu1 %2009, %v2485_v53  }
 0x1b4   : > { %v1035_v54 = vadd.f32 %v1019_v31, %v875_v33  ;;  %v669_v33 = vrot.slane %v2349_v6, %v2527_v2 }
 0x1b5   : > { %v1056_v16 = vpop.permute.xlu0 %1055 }
 0x1b6   : > { %v2544_v19 = vpop.permute.xlu1 %1087  ;;  %2018 = vset.pattern.permute.xlu0 %v2196_v41  ;;  %v1179_v38 = vmul.f32 %v1121_v26, %v1056_v16  ;;  %v509_v26 = vrot.slane %v2349_v6, %v2521_v0 }
 0x1b7   : > { %1251 = vperm.xlu1 %2009, %v2482_v52   ;;  %1231 = vperm.xlu0 %2018, %v2503_v55  }
 0x1b8   : > { %v1195_v40 = vadd.f32 %v1179_v38, %v1035_v54  ;;  %v637_v38 = vrot.slane %v2346_v5, %v2527_v2 }
 0x1ba   : > { %v2557_v27 = vpop.permute.xlu0 %1247 }
 0x1bb   : > { %v1216_v29 = vpop.permute.xlu1 %1215  ;;  %2010 = vset.pattern.permute.xlu1 %v2197_v42  ;;  %1263 = vperm.xlu0 %2018, %v2511_v57  }
 0x1bc   : > { %1379 = vperm.xlu1 %2010, %v2485_v53   ;;  %v1339_v58 = vmul.f32 %v1281_v32, %v1216_v29 }
 0x1be   : > { %v1355_v4 = vadd.f32 %v1339_v58, %v1195_v40 }
 0x1bf   : > { %v1376_v48 = vpop.permute.xlu0 %1375  ;;  %2020 = vset.pattern.permute.xlu0 %v2198_v44 }
 0x1c0   : > { %v2572_v60 = vpop.permute.xlu1 %1407  ;;  %2012 = vset.pattern.permute.xlu1 %v2198_v44  ;;  %1551 = vperm.xlu0 %2020, %v2503_v55   ;;  %v1499_v62 = vmul.f32 %v1441_v43, %v1376_v48  ;;  %v829_v48 = vrot.slane %v2349_v6, %v2531_v7 }
 0x1c1   : > { %1539 = vperm.xlu1 %2012, %v2485_v53   ;;  %v2585_v53 = vpop.eup %2068 }
 0x1c2   : > { %v1515_v16 = vadd.f32 %v1499_v62, %v1355_v4  ;;  %v797_v4 = vrot.slane %v2346_v5, %v2531_v7 }
 0x1c4   : > { %v397_v9 = vpop.permute.xlu0 %396  ;;  %2021 = vset.pattern.permute.xlu0 %v2191_v22 }
 0x1c5   : > { %v1536_v14 = vpop.permute.xlu1 %1535  ;;  %2013 = vset.pattern.permute.xlu1 %v2191_v22  ;;  %416 = vperm.xlu0 %2021, %v2579_v61   ;;  %v538_v54 = vmul.f32 %v477_v30, %v397_v9  ;;  %v989_v9 = vrot.slane %v2349_v6, %v2538_v15 }
 0x1c6   : > { %v1659_v17 = vmul.f32 %v1601_v1, %v1536_v14  ;;  %421 = vperm.xlu1 %2013, %v2503_v55  }
 0x1c8   : > { %v1675_v20 = vadd.f32 %v1659_v17, %v1515_v16  ;;  %v437_v8 = vpop.permute.xlu0 %436  ;;  %v554_v17 = vadd.f32 %v538_v54, %v2346_v5  ;;  %v1309_v54 = vrot.slane %v2349_v6, %v2552_v24 }
 0x1c9   : > { %456 = vperm.xlu0 %2021, %v2585_v53   ;;  %v546_v32 = vmul.f32 %v509_v26, %v437_v8 }
 0x1ca   : > { %v1691_v21 = vmax.f32 %v1675_v20, 0.0  ;;  %v604_v23 = vpop.permute.xlu1 %603  ;;  %461 = vperm.xlu1 %2013, %v2511_v57   ;;  %v957_v20 = vrot.slane %v2346_v5, %v2538_v15 }
 0x1cb   : > { %v562_v58 = vadd.f32 %v546_v32, %v2349_v6  ;;  %v706_v40 = vmul.f32 %v669_v33, %v604_v23  ;;  %v1117_v33 = vrot.slane %v2346_v5, %v2542_v18 }
 0x1cc   : > { %1707 = vst.msk [vmem:[%s2591_s16 + $0x8] sm:$0xff] %vm184_vm0, %v1691_v21  ;;  %v1149_v21 = vrot.slane %v2349_v6, %v2542_v18 }
 0x1cd   : > { %v572_v25 = vpop.permute.xlu0 %571  ;;  %2023 = vset.pattern.permute.xlu0 %v2193_v36  ;;  %v722_v8 = vadd.f32 %v706_v40, %v562_v58 }
 0x1ce   : > { %2015 = vset.pattern.permute.xlu1 %v2193_v36  ;;  %747 = vperm.xlu0 %2023, %v2579_v61   ;;  %v698_v1 = vmul.f32 %v637_v38, %v572_v25 }
 0x1cf   : > { %v732_v29 = vpop.permute.xlu1 %731  ;;  %751 = vperm.xlu1 %2015, %v2503_v55  }
 0x1d0   : > { %v714_v23 = vadd.f32 %v698_v1, %v554_v17  ;;  %v858_v25 = vmul.f32 %v797_v4, %v732_v29 }
 0x1d2   : > { %v764_v31 = vpop.permute.xlu0 %763  ;;  %779 = vperm.xlu0 %2023, %v2585_v53   ;;  %v874_v58 = vadd.f32 %v858_v25, %v714_v23 }
 0x1d3   : > { %783 = vperm.xlu1 %2015, %v2511_v57   ;;  %v866_v14 = vmul.f32 %v829_v48, %v764_v31 }
 0x1d4   : > { %v924_v43 = vpop.permute.xlu1 %923 }
 0x1d5   : > { %v882_v30 = vadd.f32 %v866_v14, %v722_v8  ;;  %v1026_v31 = vmul.f32 %v989_v9, %v924_v43  ;;  %v1469_v9 = vrot.slane %v2349_v6, %v2559_v28 }
 0x1d6   : > { %2025 = vset.pattern.permute.xlu0 %v2195_v39 }
 0x1d7   : > { %2017 = vset.pattern.permute.xlu1 %v2195_v39  ;;  %v892_v62 = vpop.permute.xlu0 %891  ;;  %1067 = vperm.xlu0 %2025, %v2579_v61   ;;  %v1042_v29 = vadd.f32 %v1026_v31, %v882_v30  ;;  %v1597_v31 = vrot.slane %v2346_v5, %v2569_v45 }
 0x1d8   : > { %1071 = vperm.xlu1 %2017, %v2503_v55   ;;  %v1018_v32 = vmul.f32 %v957_v20, %v892_v62  ;;  %v1437_v20 = vrot.slane %v2346_v5, %v2559_v28 }
 0x1d9   : > { %v1052_v16 = vpop.permute.xlu1 %1051 }
 0x1da   : > { %v1034_v40 = vadd.f32 %v1018_v32, %v874_v58  ;;  %v1178_v62 = vmul.f32 %v1117_v33, %v1052_v16 }
 0x1db   : > { %1099 = vperm.xlu0 %2025, %v2585_v53  }
 0x1dc   : > { %1103 = vperm.xlu1 %2017, %v2511_v57   ;;  %v1084_v26 = vpop.permute.xlu0 %1083  ;;  %v1194_v16 = vadd.f32 %v1178_v62, %v1034_v40  ;;  %v521_v62 = vrot.slane %v2376_v13, %v2521_v0 }
 0x1dd   : > { %v1186_v48 = vmul.f32 %v1149_v21, %v1084_v26 }
 0x1de   : > { %v1244_v38 = vpop.permute.xlu1 %1243 }
 0x1df   : > { %2027 = vset.pattern.permute.xlu0 %v2197_v42  ;;  %v1202_v1 = vadd.f32 %v1186_v48, %v1042_v29  ;;  %v1346_v4 = vmul.f32 %v1309_v54, %v1244_v38 }
 0x1e0   : > { %2019 = vset.pattern.permute.xlu1 %v2197_v42  ;;  %1387 = vperm.xlu0 %2027, %v2579_v61  }
 0x1e1   : > { %1391 = vperm.xlu1 %2019, %v2503_v55   ;;  %v1212_v43 = vpop.permute.xlu0 %1211  ;;  %v2647_v55 = vpop.eup %2070  ;;  %v1362_v21 = vadd.f32 %v1346_v4, %v1202_v1  ;;  %v681_v4 = vrot.slane %v2376_v13, %v2527_v2 }
 0x1e2   : > { %v1338_v17 = vmul.f32 %v1277_v46, %v1212_v43  ;;  %v2654_v6 = vpop.eup %2072 }
 0x1e3   : > { %v1372_v14 = vpop.permute.xlu1 %1371 }
 0x1e4   : > { %1419 = vperm.xlu0 %2027, %v2585_v53   ;;  %v1354_v25 = vadd.f32 %v1338_v17, %v1194_v16  ;;  %v1498_v26 = vmul.f32 %v1437_v20, %v1372_v14  ;;  %v489_v16 = vrot.slane %v2371_v12, %v2521_v0 }
 0x1e5   : > { %1423 = vperm.xlu1 %2019, %v2511_v57  }
 0x1e6   : > { %v1404_v8 = vpop.permute.xlu0 %1403  ;;  %v1514_v54 = vadd.f32 %v1498_v26, %v1354_v25  ;;  %v1001_v26 = vrot.slane %v2376_v13, %v2538_v15 }
 0x1e7   : > { %v1506_v23 = vmul.f32 %v1469_v9, %v1404_v8 }
 0x1e8   : > { %v1564_v30 = vpop.permute.xlu1 %1563  ;;  %2030 = vset.pattern.permute.xlu0 %v2192_v35 }
 0x1e9   : > { %v1522_v32 = vadd.f32 %v1506_v23, %v1362_v21  ;;  %v1666_v33 = vmul.f32 %v1629_v47, %v1564_v30  ;;  %2022 = vset.pattern.permute.xlu1 %v2192_v35  ;;  %599 = vperm.xlu0 %2030, %v2647_v55   ;;  %v841_v47 = vrot.slane %v2376_v13, %v2531_v7 }
 0x1ea   : > { %587 = vperm.xlu1 %2022, %v2579_v61   ;;  %v649_v23 = vrot.slane %v2371_v12, %v2527_v2 }
 0x1eb   : > { %v1682_v38 = vadd.f32 %v1666_v33, %v1522_v32  ;;  %v1532_v48 = vpop.permute.xlu0 %1531  ;;  %v809_v33 = vrot.slane %v2371_v12, %v2531_v7 }
 0x1ec   : > { %v1658_v58 = vmul.f32 %v1597_v31, %v1532_v48 }
 0x1ed   : > { %v1698_v46 = vmax.f32 %v1682_v38, 0.0  ;;  %v412_v29 = vpop.permute.xlu1 %411  ;;  %631 = vperm.xlu0 %2030, %v2654_v6  }
 0x1ee   : > { %v1674_v5 = vadd.f32 %v1658_v58, %v1514_v54  ;;  %619 = vperm.xlu1 %2022, %v2585_v53   ;;  %v541_v32 = vmul.f32 %v489_v16, %v412_v29  ;;  %v969_v58 = vrot.slane %v2371_v12, %v2538_v15 }
 0x1ef   : > { %1714 = vst.msk [vmem:[%s2591_s16 + $0x40] sm:$0xff] %vm184_vm0, %v1698_v46 }
 0x1f0   : > { %v1690_v43 = vmax.f32 %v1674_v5, 0.0  ;;  %v584_v40 = vpop.permute.xlu0 %583  ;;  %v1129_v5 = vrot.slane %v2371_v12, %v2542_v18  ;;  %v557_v29 = vadd.f32 %v541_v32, %v2371_v12 }
 0x1f1   : > { %v452_v1 = vpop.permute.xlu1 %451  ;;  %2032 = vset.pattern.permute.xlu0 %v2194_v37  ;;  %v701_v54 = vmul.f32 %v649_v23, %v584_v40  ;;  %v1161_v40 = vrot.slane %v2376_v13, %v2542_v18 }
 0x1f2   : > { %1706 = vst.msk [vmem:[%s2591_s16] sm:$0xff] %vm184_vm0, %v1690_v43  ;;  %2024 = vset.pattern.permute.xlu1 %v2194_v37  ;;  %919 = vperm.xlu0 %2032, %v2647_v55   ;;  %v549_v9 = vmul.f32 %v521_v62, %v452_v1 }
 0x1f3   : > { %907 = vperm.xlu1 %2024, %v2579_v61   ;;  %v717_v50 = vadd.f32 %v701_v54, %v557_v29 }
 0x1f4   : > { %v616_v14 = vpop.permute.xlu0 %615  ;;  %v565_v8 = vadd.f32 %v549_v9, %v2376_v13 }
 0x1f5   : > { %v709_v20 = vmul.f32 %v681_v4, %v616_v14  ;;  %v1289_v14 = vrot.slane %v2371_v12, %v2552_v24 }
 0x1f6   : > { %v744_v17 = vpop.permute.xlu1 %743  ;;  %951 = vperm.xlu0 %2032, %v2654_v6  }
 0x1f7   : > { %939 = vperm.xlu1 %2024, %v2585_v53   ;;  %v725_v30 = vadd.f32 %v709_v20, %v565_v8  ;;  %v861_v62 = vmul.f32 %v809_v33, %v744_v17  ;;  %v1321_v17 = vrot.slane %v2376_v13, %v2552_v24 }
 0x1f9   : > { %v904_v21 = vpop.permute.xlu0 %903 }
 0x1fa   : > { %v776_v25 = vpop.permute.xlu1 %775  ;;  %2034 = vset.pattern.permute.xlu0 %v2196_v41  ;;  %v1021_v4 = vmul.f32 %v969_v58, %v904_v21 }
 0x1fb   : > { %v869_v31 = vmul.f32 %v841_v47, %v776_v25  ;;  %2026 = vset.pattern.permute.xlu1 %v2196_v41  ;;  %1239 = vperm.xlu0 %2034, %v2647_v55   ;;  %v877_v47 = vadd.f32 %v861_v62, %v717_v50 }
 0x1fc   : > { %1227 = vperm.xlu1 %2026, %v2579_v61  }
 0x1fd   : > { %v885_v38 = vadd.f32 %v869_v31, %v725_v30  ;;  %v936_v48 = vpop.permute.xlu0 %935  ;;  %v1037_v21 = vadd.f32 %v1021_v4, %v877_v47  ;;  %v2709_v31 = vpop.eup %2074  ;;  %v517_v4 = vrot.slane %v2363_v11, %v2521_v0 }
 0x1fe   : > { %v1029_v46 = vmul.f32 %v1001_v26, %v936_v48 }
 0x1ff   : > { %v1064_v43 = vpop.permute.xlu1 %1063  ;;  %1271 = vperm.xlu0 %2034, %v2654_v6  }
 0x200   : > { %v1045_v1 = vadd.f32 %v1029_v46, %v885_v38  ;;  %1259 = vperm.xlu1 %2026, %v2585_v53   ;;  %v1181_v16 = vmul.f32 %v1129_v5, %v1064_v43  ;;  %v1609_v38 = vrot.slane %v2371_v12, %v2569_v45  ;;  %v2719_v5 = vpop.eup %2076 }
 0x202   : > { %v1224_v9 = vpop.permute.xlu0 %1223  ;;  %v1197_v32 = vadd.f32 %v1181_v16, %v1037_v21 }
 0x203   : > { %v1096_v20 = vpop.permute.xlu1 %1095  ;;  %2036 = vset.pattern.permute.xlu0 %v2198_v44  ;;  %v1341_v23 = vmul.f32 %v1289_v14, %v1224_v9 }
 0x204   : > { %v1189_v8 = vmul.f32 %v1161_v40, %v1096_v20  ;;  %2028 = vset.pattern.permute.xlu1 %v2198_v44  ;;  %1559 = vperm.xlu0 %2036, %v2647_v55  }
 0x205   : > { %1547 = vperm.xlu1 %2028, %v2579_v61   ;;  %v1481_v61 = vrot.slane %v2376_v13, %v2559_v28  ;;  %v1357_v58 = vadd.f32 %v1341_v23, %v1197_v32 }
 0x206   : > { %v1205_v25 = vadd.f32 %v1189_v8, %v1045_v1  ;;  %v1256_v26 = vpop.permute.xlu0 %1255 }
 0x207   : > { %v1349_v30 = vmul.f32 %v1321_v17, %v1256_v26  ;;  %v677_v17 = vrot.slane %v2363_v11, %v2527_v2 }
 0x208   : > { %v1384_v33 = vpop.permute.xlu1 %1383  ;;  %2037 = vset.pattern.permute.xlu0 %v2191_v22 }
 0x209   : > { %v1365_v48 = vadd.f32 %v1349_v30, %v1205_v25  ;;  %v1501_v54 = vmul.f32 %v1449_v51, %v1384_v33  ;;  %2029 = vset.pattern.permute.xlu1 %v2191_v22  ;;  %426 = vperm.xlu0 %2037, %v2709_v31   ;;  %v997_v33 = vrot.slane %v2363_v11, %v2538_v15 }
 0x20a   : > { %431 = vperm.xlu1 %2029, %v2647_v55  }
 0x20b   : > { %v1544_v46 = vpop.permute.xlu0 %1543  ;;  %v1517_v43 = vadd.f32 %v1501_v54, %v1357_v58 }
 0x20c   : > { %v1661_v29 = vmul.f32 %v1609_v38, %v1544_v46  ;;  %v1416_v62 = vpop.permute.xlu1 %1415  ;;  %v1157_v38 = vrot.slane %v2363_v11, %v2542_v18 }
 0x20d   : > { %v1509_v12 = vmul.f32 %v1481_v61, %v1416_v62  ;;  %466 = vperm.xlu0 %2037, %v2719_v5   ;;  %v645_v62 = vrot.slane %v2360_v10, %v2527_v2 }
 0x20e   : > { %v1677_v1 = vadd.f32 %v1661_v29, %v1517_v43  ;;  %471 = vperm.xlu1 %2029, %v2654_v6  }
 0x20f   : > { %v2723_v22 = vadd.f32 %v1509_v12, %v1365_v48 }
 0x210   : > { %v1693_v40 = vmax.f32 %v1677_v1, 0.0  ;;  %v447_v13 = vpop.permute.xlu0 %446  ;;  %v805_v1 = vrot.slane %v2360_v10, %v2531_v7 }
 0x211   : > { %v407_v50 = vpop.permute.xlu1 %406  ;;  %2039 = vset.pattern.permute.xlu0 %v2193_v36  ;;  %v548_v20 = vmul.f32 %v517_v4, %v447_v13  ;;  %v1317_v4 = vrot.slane %v2363_v11, %v2552_v24 }
 0x212   : > { %1709 = vst.msk [vmem:[%s2591_s16 + $0x18] sm:$0xff] %vm184_vm0, %v1693_v40  ;;  %2031 = vset.pattern.permute.xlu1 %v2193_v36  ;;  %755 = vperm.xlu0 %2039, %v2709_v31   ;;  %v837_v36 = vrot.slane %v2363_v11, %v2531_v7 }
 0x213   : > { %759 = vperm.xlu1 %2031, %v2647_v55   ;;  %v564_v8 = vadd.f32 %v548_v20, %v2363_v11  ;;  %v1477_v20 = vrot.slane %v2363_v11, %v2559_v28 }
 0x215   : > { %v772_v14 = vpop.permute.xlu0 %771 }
 0x216   : > { %v580_v9 = vpop.permute.xlu1 %579  ;;  %787 = vperm.xlu0 %2039, %v2719_v5   ;;  %v868_v21 = vmul.f32 %v837_v36, %v772_v14 }
 0x217   : > { %791 = vperm.xlu1 %2031, %v2654_v6  }
 0x21a   : > { %v612_v47 = vpop.permute.xlu1 %611  ;;  %v1092_v16 = vpop.permute.xlu0 %1091  ;;  %2041 = vset.pattern.permute.xlu0 %v2195_v39 }
 0x21b   : > { %v708_v51 = vmul.f32 %v677_v17, %v612_v47  ;;  %2033 = vset.pattern.permute.xlu1 %v2195_v39  ;;  %1075 = vperm.xlu0 %2041, %v2709_v31  }
 0x21c   : > { %1079 = vperm.xlu1 %2033, %v2647_v55  }
 0x21d   : > { %v724_v23 = vadd.f32 %v708_v51, %v564_v8  ;;  %v2078_v51 = vld [vmem:[%s2327_s6 + $0x10] sm:$0xff] }
 0x21e   : > { %v1445_v11 = vrot.slane %v2078_v51, %v2559_v28 }
 0x21f   : > { %v740_v25 = vpop.permute.xlu1 %739  ;;  %1107 = vperm.xlu0 %2041, %v2719_v5   ;;  %v884_v26 = vadd.f32 %v868_v21, %v724_v23  ;;  %v1412_v30 = vpop.permute.xlu0 %1411 }
 0x220   : > { %1111 = vperm.xlu1 %2033, %v2654_v6   ;;  %v860_v14 = vmul.f32 %v805_v1, %v740_v25  ;;  %v1508_v23 = vmul.f32 %v1477_v20, %v1412_v30  ;;  %v2809_v1 = vld [vmem:[%s2327_s6 + $0x68] sm:$0xff] }
 0x223   : > { %2043 = vset.pattern.permute.xlu0 %v2197_v42 }
 0x224   : > { %v900_v32 = vpop.permute.xlu1 %899  ;;  %2035 = vset.pattern.permute.xlu1 %v2197_v42  ;;  %1395 = vperm.xlu0 %2043, %v2709_v31   ;;  %v2749_v39 = vpop.permute.xlu0 %591  ;;  %v1188_v42 = vmul.f32 %v1157_v38, %v1092_v16  ;;  %v1285_v16 = vrot.slane %v2360_v10, %v2552_v24 }
 0x225   : > { %1399 = vperm.xlu1 %2035, %v2647_v55   ;;  %v485_v55 = vrot.slane %v2360_v10, %v2521_v0 }
 0x227   : > { %v540_v12 = vmul.f32 %v485_v55, %v407_v50 }
 0x228   : > { %v932_v48 = vpop.permute.xlu1 %931  ;;  %1427 = vperm.xlu0 %2043, %v2719_v5   ;;  %v2757_v54 = vpop.permute.xlu0 %623 }
 0x229   : > { %v1028_v61 = vmul.f32 %v997_v33, %v932_v48  ;;  %1431 = vperm.xlu1 %2035, %v2654_v6   ;;  %v556_v50 = vadd.f32 %v540_v12, %v2360_v10 }
 0x22b   : > { %v1044_v58 = vadd.f32 %v1028_v61, %v884_v26  ;;  %v1605_v61 = vrot.slane %v2078_v51, %v2569_v45  ;;  %v849_v51 = vrot.slane %v2809_v1, %v2531_v7 }
 0x22c   : > { %2044 = vset.pattern.permute.xlu0 %v2198_v44 }
 0x22d   : > { %v1060_v46 = vpop.permute.xlu1 %1059  ;;  %2038 = vset.pattern.permute.xlu1 %v2192_v35  ;;  %1567 = vperm.xlu0 %2044, %v2412_v34   ;;  %v2765_v43 = vpop.permute.xlu0 %911  ;;  %v1204_v29 = vadd.f32 %v1188_v42, %v1044_v58  ;;  %v700_v34 = vmul.f32 %v645_v62, %v580_v9  ;;  %v965_v35 = vrot.slane %v2360_v10, %v2538_v15 }
 0x22e   : > { %595 = vperm.xlu1 %2038, %v2709_v31  }
 0x22f   : > { %v716_v36 = vadd.f32 %v700_v34, %v556_v50  ;;  %v1020_v47 = vmul.f32 %v965_v35, %v900_v32  ;;  %v2080_v35 = vld [vmem:[%s2327_s6 + $0x28] sm:$0xff] }
 0x231   : > { %1575 = vperm.xlu0 %2044, %v2460_v49   ;;  %v2773_v40 = vpop.permute.xlu0 %943  ;;  %v1125_v49 = vrot.slane %v2360_v10, %v2542_v18  ;;  %v876_v21 = vadd.f32 %v860_v14, %v716_v36 }
 0x232   : > { %v1220_v13 = vpop.permute.xlu1 %1219  ;;  %627 = vperm.xlu1 %2038, %v2719_v5  }
 0x233   : > { %v1180_v25 = vmul.f32 %v1125_v49, %v1060_v46  ;;  %v1036_v26 = vadd.f32 %v1020_v47, %v876_v21  ;;  %v1340_v33 = vmul.f32 %v1285_v16, %v1220_v13  ;;  %v689_v13 = vrot.slane %v2809_v1, %v2527_v2 }
 0x234   : > { %v657_v16 = vrot.slane %v2080_v35, %v2527_v2 }
 0x235   : > { %1583 = vperm.xlu0 %2044, %v2511_v57   ;;  %v1196_v38 = vadd.f32 %v1180_v25, %v1036_v26  ;;  %v711_v20 = vmul.f32 %v689_v13, %v2757_v54  ;;  %v1457_v13 = vrot.slane %v2080_v35, %v2559_v28 }
 0x236   : > { %v1252_v17 = vpop.permute.xlu1 %1251  ;;  %2040 = vset.pattern.permute.xlu1 %v2194_v37  ;;  %v2787_v9 = vpop.permute.xlu0 %1231 }
 0x237   : > { %v1348_v8 = vmul.f32 %v1317_v4, %v1252_v17  ;;  %915 = vperm.xlu1 %2040, %v2709_v31   ;;  %v1356_v30 = vadd.f32 %v1340_v33, %v1196_v38  ;;  %v497_v4 = vrot.slane %v2080_v35, %v2521_v0  ;;  %v1137_v38 = vrot.slane %v2080_v35, %v2542_v18 }
 0x239   : > { %v1364_v57 = vadd.f32 %v1348_v8, %v1204_v29  ;;  %1591 = vperm.xlu0 %2044, %v2654_v6   ;;  %v817_v8 = vrot.slane %v2080_v35, %v2531_v7 }
 0x23a   : > { %v2795_v37 = vpop.permute.xlu0 %1263 }
 0x23b   : > { %v1380_v32 = vpop.permute.xlu1 %1379  ;;  %947 = vperm.xlu1 %2040, %v2719_v5   ;;  %v2798_v10 = vadd.f32 %v1508_v23, %v1364_v57  ;;  %v977_v57 = vrot.slane %v2080_v35, %v2538_v15 }
 0x23c   : > { %v1500_v48 = vmul.f32 %v1445_v11, %v1380_v32 }
 0x23e   : > { %v1516_v58 = vadd.f32 %v1500_v48, %v1356_v30 }
 0x23f   : > { %2042 = vset.pattern.permute.xlu1 %v2196_v41  ;;  %v2802_v42 = vpop.permute.xlu0 %1551  ;;  %v529_v41 = vrot.slane %v2809_v1, %v2521_v0 }
 0x240   : > { %v1540_v6 = vpop.permute.xlu1 %1539  ;;  %1235 = vperm.xlu1 %2042, %v2709_v31  }
 0x241   : > { %v1660_v55 = vmul.f32 %v1605_v61, %v1540_v6  ;;  %v1023_v6 = vmul.f32 %v977_v57, %v2765_v43  ;;  %v1617_v43 = vrot.slane %v2080_v35, %v2569_v45 }
 0x243   : > { %v1676_v46 = vadd.f32 %v1660_v55, %v1516_v58 }
 0x244   : > { %1267 = vperm.xlu1 %2042, %v2719_v5   ;;  %v2806_v29 = vpop.permute.xlu0 %416 }
 0x245   : > { %v1692_v62 = vmax.f32 %v1676_v46, 0.0  ;;  %v422_v12 = vpop.permute.xlu1 %421  ;;  %v1297_v46 = vrot.slane %v2080_v35, %v2552_v24 }
 0x246   : > { %v543_v17 = vmul.f32 %v497_v4, %v422_v12 }
 0x247   : > { %1708 = vst.msk [vmem:[%s2591_s16 + $0x10] sm:$0xff] %vm184_vm0, %v1692_v62 }
 0x248   : > { %2045 = vset.pattern.permute.xlu1 %v2198_v44  ;;  %v2818_v34 = vpop.permute.xlu0 %456  ;;  %v559_v54 = vadd.f32 %v2080_v35, %v543_v17 }
 0x249   : > { %v462_v50 = vpop.permute.xlu1 %461  ;;  %1555 = vperm.xlu1 %2045, %v2709_v31   ;;  %v1009_v31 = vrot.slane %v2809_v1, %v2538_v15 }
 0x24a   : > { %v551_v14 = vmul.f32 %v529_v41, %v462_v50 }
 0x24b   : > { %v1031_v26 = vmul.f32 %v1009_v31, %v2773_v40  ;;  %v1329_v40 = vrot.slane %v2809_v1, %v2552_v24 }
 0x24c   : > { %v567_v49 = vadd.f32 %v2809_v1, %v551_v14  ;;  %v1343_v14 = vmul.f32 %v1297_v46, %v2787_v9 }
 0x24d   : > { %1571 = vperm.xlu1 %2045, %v2482_v52   ;;  %v2826_v36 = vpop.permute.xlu0 %747  ;;  %v703_v52 = vmul.f32 %v657_v16, %v2749_v39  ;;  %v1169_v39 = vrot.slane %v2809_v1, %v2542_v18  ;;  %v1351_v4 = vmul.f32 %v1329_v40, %v2795_v37  ;;  %v1489_v16 = vrot.slane %v2809_v1, %v2559_v28 }
 0x24e   : > { %v752_v47 = vpop.permute.xlu1 %751  ;;  %v727_v44 = vadd.f32 %v711_v20, %v567_v49 }
 0x24f   : > { %v863_v23 = vmul.f32 %v817_v8, %v752_v47  ;;  %v719_v33 = vadd.f32 %v703_v52, %v559_v54  ;;  %v1663_v8 = vmul.f32 %v1617_v43, %v2802_v42 }
 0x251   : > { %1579 = vperm.xlu1 %2045, %v2585_v53   ;;  %v780_v11 = vpop.permute.xlu0 %779  ;;  %v879_v61 = vadd.f32 %v863_v23, %v719_v33  ;;  %v2082_v33 = vld [vmem:[%s2327_s6 + $0x20] sm:$0xff] }
 0x252   : > { %v784_v21 = vpop.permute.xlu1 %783 }
 0x253   : > { %v871_v25 = vmul.f32 %v849_v51, %v784_v21  ;;  %v2858_v21 = vld [vmem:[%s2327_s6 + $0x60] sm:$0xff] }
 0x254   : > { %v525_v35 = vrot.slane %v2858_v21, %v2521_v0 }
 0x255   : > { %v887_v32 = vadd.f32 %v871_v25, %v727_v44  ;;  %1587 = vperm.xlu1 %2045, %v2719_v5   ;;  %v1039_v5 = vadd.f32 %v1023_v6, %v879_v61 }
 0x256   : > { %v2840_v48 = vpop.permute.xlu0 %1067  ;;  %v550_v42 = vmul.f32 %v525_v35, %v2818_v34 }
 0x257   : > { %v1072_v53 = vpop.permute.xlu1 %1071  ;;  %v1047_v30 = vadd.f32 %v1031_v26, %v887_v32  ;;  %v685_v26 = vrot.slane %v2858_v21, %v2527_v2  ;;  %v493_v32 = vrot.slane %v2082_v33, %v2521_v0 }
 0x258   : > { %v1183_v58 = vmul.f32 %v1137_v38, %v1072_v53  ;;  %v845_v38 = vrot.slane %v2858_v21, %v2531_v7  ;;  %v653_v53 = vrot.slane %v2082_v33, %v2527_v2 }
 0x25a   : > { %v1100_v55 = vpop.permute.xlu0 %1099  ;;  %v1199_v41 = vadd.f32 %v1183_v58, %v1039_v5  ;;  %v542_v58 = vmul.f32 %v493_v32, %v2806_v29  ;;  %v870_v34 = vmul.f32 %v845_v38, %v780_v11 }
 0x25b   : > { %v1104_v62 = vpop.permute.xlu1 %1103 }
 0x25c   : > { %v1191_v12 = vmul.f32 %v1169_v39, %v1104_v62  ;;  %v1359_v47 = vadd.f32 %v1343_v14, %v1199_v41  ;;  %v566_v39 = vadd.f32 %v2858_v21, %v550_v42  ;;  %v558_v41 = vadd.f32 %v2082_v33, %v542_v58 }
 0x25d   : > { %v1165_v14 = vrot.slane %v2858_v21, %v2542_v18 }
 0x25e   : > { %v1207_v50 = vadd.f32 %v1191_v12, %v1047_v30 }
 0x25f   : > { %v2852_v20 = vpop.permute.xlu0 %1387 }
 0x260   : > { %v1392_v49 = vpop.permute.xlu1 %1391  ;;  %v1367_v17 = vadd.f32 %v1351_v4, %v1207_v50  ;;  %v973_v4 = vrot.slane %v2082_v33, %v2538_v15  ;;  %v1005_v50 = vrot.slane %v2858_v21, %v2538_v15 }
 0x261   : > { %v1503_v44 = vmul.f32 %v1457_v13, %v1392_v49  ;;  %v813_v13 = vrot.slane %v2082_v33, %v2531_v7 }
 0x263   : > { %v1519_v37 = vadd.f32 %v1503_v44, %v1359_v47  ;;  %v1420_v31 = vpop.permute.xlu0 %1419  ;;  %v862_v49 = vmul.f32 %v813_v13, %v2826_v36  ;;  %v1133_v44 = vrot.slane %v2082_v33, %v2542_v18 }
 0x264   : > { %v1424_v51 = vpop.permute.xlu1 %1423 }
 0x265   : > { %v1679_v54 = vadd.f32 %v1663_v8, %v1519_v37  ;;  %v1511_v9 = vmul.f32 %v1489_v16, %v1424_v51  ;;  %v1190_v16 = vmul.f32 %v1165_v14, %v1100_v55  ;;  %v1293_v51 = vrot.slane %v2082_v33, %v2552_v24 }
 0x266   : > { %v1182_v42 = vmul.f32 %v1133_v44, %v2840_v48  ;;  %v1453_v55 = vrot.slane %v2082_v33, %v2559_v28 }
 0x267   : > { %v1695_v52 = vmax.f32 %v1679_v54, 0.0  ;;  %v2862_v23 = vadd.f32 %v1511_v9, %v1367_v17 }
 0x268   : > { %v2864_v25 = vpop.permute.xlu0 %599  ;;  %v1502_v48 = vmul.f32 %v1453_v55, %v2852_v20 }
 0x269   : > { %1711 = vst.msk [vmem:[%s2591_s16 + $0x28] sm:$0xff] %vm184_vm0, %v1695_v52  ;;  %v588_v57 = vpop.permute.xlu1 %587 }
 0x26a   : > { %v702_v46 = vmul.f32 %v653_v53, %v588_v57  ;;  %v1325_v57 = vrot.slane %v2858_v21, %v2552_v24 }
 0x26c   : > { %v2875_v61 = vpop.permute.xlu0 %631  ;;  %v718_v43 = vadd.f32 %v702_v46, %v558_v41 }
 0x26d   : > { %v620_v30 = vpop.permute.xlu1 %619 }
 0x26e   : > { %v710_v6 = vmul.f32 %v685_v26, %v620_v30  ;;  %v878_v8 = vadd.f32 %v862_v49, %v718_v43  ;;  %v1485_v26 = vrot.slane %v2858_v21, %v2559_v28 }
 0x270   : > { %v726_v40 = vadd.f32 %v710_v6, %v566_v39  ;;  %v1613_v6 = vrot.slane %v2082_v33, %v2569_v45  ;;  %v1510_v58 = vmul.f32 %v1485_v26, %v1420_v31  ;;  %v2083_v31 = vld [vmem:[%s2327_s6 + $0x38] sm:$0xff] }
 0x271   : > { %v2880_v5 = vpop.permute.xlu0 %919  ;;  %v505_v20 = vrot.slane %v2083_v31, %v2521_v0  ;;  %v825_v44 = vrot.slane %v2083_v31, %v2531_v7 }
 0x272   : > { %v908_v62 = vpop.permute.xlu1 %907  ;;  %v886_v12 = vadd.f32 %v870_v34, %v726_v40 }
 0x273   : > { %v1022_v17 = vmul.f32 %v973_v4, %v908_v62 }
 0x275   : > { %v2888_v29 = vpop.permute.xlu0 %951  ;;  %v1038_v9 = vadd.f32 %v1022_v17, %v878_v8 }
 0x276   : > { %v940_v11 = vpop.permute.xlu1 %939 }
 0x277   : > { %v1030_v47 = vmul.f32 %v1005_v50, %v940_v11  ;;  %v1198_v38 = vadd.f32 %v1182_v42, %v1038_v9 }
 0x279   : > { %v1046_v37 = vadd.f32 %v1030_v47, %v886_v12  ;;  %v665_v47 = vrot.slane %v2083_v31, %v2527_v2 }
 0x27a   : > { %v2893_v54 = vpop.permute.xlu0 %1239 }
 0x27b   : > { %v1228_v35 = vpop.permute.xlu1 %1227  ;;  %v1206_v52 = vadd.f32 %v1190_v16, %v1046_v37 }
 0x27c   : > { %v1342_v36 = vmul.f32 %v1293_v51, %v1228_v35  ;;  %v705_v51 = vmul.f32 %v665_v47, %v2864_v25  ;;  %v2925_v35 = vld [vmem:[%s2327_s6 + $0x48] sm:$0xff] }
 0x27d   : > { %v673_v26 = vrot.slane %v2925_v35, %v2527_v2  ;;  %v1313_v47 = vrot.slane %v2925_v35, %v2552_v24 }
 0x27e   : > { %v2900_v32 = vpop.permute.xlu0 %1271  ;;  %v1358_v39 = vadd.f32 %v1342_v36, %v1198_v38  ;;  %v1145_v36 = vrot.slane %v2083_v31, %v2542_v18 }
 0x27f   : > { %v1260_v53 = vpop.permute.xlu1 %1259 }
 0x280   : > { %v1350_v30 = vmul.f32 %v1325_v57, %v1260_v53  ;;  %v1518_v12 = vadd.f32 %v1502_v48, %v1358_v39  ;;  %v985_v57 = vrot.slane %v2083_v31, %v2538_v15 }
 0x282   : > { %v1366_v34 = vadd.f32 %v1350_v30, %v1206_v52  ;;  %v513_v52 = vrot.slane %v2925_v35, %v2521_v0  ;;  %v833_v30 = vrot.slane %v2925_v35, %v2531_v7  ;;  %v1025_v39 = vmul.f32 %v985_v57, %v2880_v5 }
 0x283   : > { %v2905_v40 = vpop.permute.xlu0 %1559  ;;  %v1473_v57 = vrot.slane %v2925_v35, %v2559_v28 }
 0x284   : > { %v1548_v46 = vpop.permute.xlu1 %1547  ;;  %v2907_v62 = vadd.f32 %v1510_v58, %v1366_v34  ;;  %v547_v25 = vmul.f32 %v513_v52, %v2505_v56  ;;  %v707_v58 = vmul.f32 %v673_v26, %v2513_v59  ;;  %v993_v34 = vrot.slane %v2925_v35, %v2538_v15 }
 0x285   : > { %v1662_v41 = vmul.f32 %v1613_v6, %v1548_v46  ;;  %v1305_v46 = vrot.slane %v2083_v31, %v2552_v24  ;;  %v867_v5 = vmul.f32 %v833_v30, %v2517_v63  ;;  %v1153_v59 = vrot.slane %v2925_v35, %v2542_v18 }
 0x287   : > { %v1678_v13 = vadd.f32 %v1662_v41, %v1518_v12  ;;  %v2946_v12 = vld [vmem:[%s2327_s6 + $0x78] sm:$0xff]  ;;  %v1187_v52 = vmul.f32 %v1153_v59, %v2544_v19 }
 0x288   : > { %v2909_v4 = vpop.permute.xlu0 %426  ;;  %v537_v56 = vrot.slane %v2946_v12, %v2521_v0 }
 0x289   : > { %v1694_v50 = vmax.f32 %v1678_v13, 0.0  ;;  %v432_v14 = vpop.permute.xlu1 %431 }
 0x28a   : > { %v545_v11 = vmul.f32 %v505_v20, %v432_v14  ;;  %v1465_v20 = vrot.slane %v2083_v31, %v2559_v28 }
 0x28b   : > { %1710 = vst.msk [vmem:[%s2591_s16 + $0x20] sm:$0xff] %vm184_vm0, %v1694_v50  ;;  %v563_v50 = vadd.f32 %v2925_v35, %v547_v25 }
 0x28c   : > { %v2913_v33 = vpop.permute.xlu0 %466  ;;  %v561_v16 = vadd.f32 %v2083_v31, %v545_v11 }
 0x28d   : > { %v472_v43 = vpop.permute.xlu1 %471  ;;  %v723_v11 = vadd.f32 %v707_v58, %v563_v50  ;;  %v1177_v50 = vrot.slane %v2946_v12, %v2542_v18 }
 0x28e   : > { %v721_v42 = vadd.f32 %v705_v51, %v561_v16  ;;  %v1625_v16 = vrot.slane %v2083_v31, %v2569_v45  ;;  %v553_v51 = vmul.f32 %v537_v56, %v472_v43  ;;  %v1347_v31 = vmul.f32 %v1313_v47, %v2557_v27 }
 0x28f   : > { %v883_v63 = vadd.f32 %v867_v5, %v723_v11  ;;  %v1633_v27 = vrot.slane %v2925_v35, %v2569_v45  ;;  %v1017_v56 = vrot.slane %v2946_v12, %v2538_v15 }
 0x290   : > { %v1665_v43 = vmul.f32 %v1625_v16, %v2905_v40 }
 0x291   : > { %v2917_v49 = vpop.permute.xlu0 %755  ;;  %v1033_v35 = vmul.f32 %v1017_v56, %v2888_v29 }
 0x292   : > { %v760_v17 = vpop.permute.xlu1 %759 }
 0x293   : > { %v865_v9 = vmul.f32 %v825_v44, %v760_v17  ;;  %v1027_v17 = vmul.f32 %v993_v34, %v2529_v3  ;;  %v1345_v44 = vmul.f32 %v1305_v46, %v2893_v54  ;;  %v697_v3 = vrot.slane %v2946_v12, %v2527_v2 }
 0x295   : > { %v2921_v8 = vpop.permute.xlu0 %787  ;;  %v881_v38 = vadd.f32 %v865_v9, %v721_v42  ;;  %v713_v58 = vmul.f32 %v697_v3, %v2875_v61 }
 0x296   : > { %v792_v37 = vpop.permute.xlu1 %791 }
 0x297   : > { %v1041_v41 = vadd.f32 %v1025_v39, %v881_v38  ;;  %v1043_v38 = vadd.f32 %v1027_v17, %v883_v63  ;;  %v1507_v39 = vmul.f32 %v1473_v57, %v2572_v60  ;;  %v2988_v17 = vld [vmem:[%s2327_s6 + $0x30] sm:$0xff]  ;;  %v1497_v63 = vrot.slane %v2946_v12, %v2559_v28 }
 0x298   : > { %v501_v47 = vrot.slane %v2988_v17, %v2521_v0 }
 0x299   : > { %v1203_v30 = vadd.f32 %v1187_v52, %v1043_v38  ;;  %v661_v52 = vrot.slane %v2988_v17, %v2527_v2 }
 0x29a   : > { %v2933_v55 = vpop.permute.xlu0 %1075 }
 0x29b   : > { %v1080_v53 = vpop.permute.xlu1 %1079  ;;  %v1363_v40 = vadd.f32 %v1347_v31, %v1203_v30 }
 0x29c   : > { %v1185_v6 = vmul.f32 %v1145_v36, %v1080_v53  ;;  %v857_v36 = vrot.slane %v2946_v12, %v2531_v7  ;;  %v569_v53 = vadd.f32 %v2946_v12, %v553_v51  ;;  %v1337_v51 = vrot.slane %v2946_v12, %v2552_v24 }
 0x29d   : > { %v1523_v59 = vadd.f32 %v1507_v39, %v1363_v40 }
 0x29e   : > { %v2942_v48 = vpop.permute.xlu0 %1107  ;;  %v1201_v14 = vadd.f32 %v1185_v6, %v1041_v41  ;;  %v873_v34 = vmul.f32 %v857_v36, %v792_v37  ;;  %v729_v41 = vadd.f32 %v713_v58, %v569_v53  ;;  %v1353_v31 = vmul.f32 %v1337_v51, %v2900_v32 }
 0x29f   : > { %v1112_v13 = vpop.permute.xlu1 %1111  ;;  %v1657_v53 = vrot.slane %v2946_v12, %v2569_v45  ;;  %v981_v32 = vrot.slane %v2988_v17, %v2538_v15 }
 0x2a0   : > { %v1361_v26 = vadd.f32 %v1345_v44, %v1201_v14  ;;  %v889_v14 = vadd.f32 %v873_v34, %v729_v41  ;;  %v1193_v44 = vmul.f32 %v1177_v50, %v1112_v13  ;;  %v544_v13 = vmul.f32 %v501_v47, %v2909_v4  ;;  %v2088_v50 = vld [vmem:[%s2327_s6 + $0x70] sm:$0xff] }
 0x2a1   : > { %v853_v51 = vrot.slane %v2088_v50, %v2531_v7 }
 0x2a2   : > { %v560_v34 = vadd.f32 %v2988_v17, %v544_v13  ;;  %v1333_v13 = vrot.slane %v2088_v50, %v2552_v24 }
 0x2a3   : > { %v2960_v9 = vpop.permute.xlu0 %1395 }
 0x2a4   : > { %v1400_v42 = vpop.permute.xlu1 %1399 }
 0x2a5   : > { %v1505_v54 = vmul.f32 %v1465_v20, %v1400_v42  ;;  %v2086_v20 = vld [vmem:[%s2327_s6 + $0x58] sm:$0xff]  ;;  %v1049_v42 = vadd.f32 %v1033_v35, %v889_v14 }
 0x2a6   : > { %v1641_v11 = vrot.slane %v2086_v20, %v2569_v45 }
 0x2a7   : > { %v1521_v19 = vadd.f32 %v1505_v54, %v1361_v26  ;;  %v2972_v25 = vpop.permute.xlu0 %1427  ;;  %v1649_v26 = vrot.slane %v2809_v1, %v2569_v45  ;;  %v1209_v54 = vadd.f32 %v1193_v44, %v1049_v42  ;;  %v821_v1 = vrot.slane %v2988_v17, %v2531_v7 }
 0x2a8   : > { %v1432_v6 = vpop.permute.xlu1 %1431  ;;  %v1173_v7 = vrot.slane %v2088_v50, %v2542_v18 }
 0x2a9   : > { %v1681_v46 = vadd.f32 %v1665_v43, %v1521_v19  ;;  %v1513_v19 = vmul.f32 %v1497_v63, %v1432_v6 }
 0x2ab   : > { %v1697_v5 = vmax.f32 %v1681_v46, 0.0  ;;  %v1369_v46 = vadd.f32 %v1353_v31, %v1209_v54 }
 0x2ac   : > { %v1568_v60 = vpop.permute.xlu0 %1567 }
 0x2ad   : > { %1713 = vst.msk [vmem:[%s2591_s16 + $0x38] sm:$0xff] %vm184_vm0, %v1697_v5  ;;  %v596_v61 = vpop.permute.xlu1 %595  ;;  %v1667_v37 = vmul.f32 %v1633_v27, %v1568_v60  ;;  %v1529_v6 = vadd.f32 %v1513_v19, %v1369_v46  ;;  %v533_v5 = vrot.slane %v2088_v50, %v2521_v0  ;;  %v864_v60 = vmul.f32 %v821_v1, %v2917_v49 }
 0x2ae   : > { %v704_v30 = vmul.f32 %v661_v52, %v596_v61  ;;  %v693_v61 = vrot.slane %v2088_v50, %v2527_v2  ;;  %v1461_v2 = vrot.slane %v2988_v17, %v2559_v28  ;;  %v1013_v52 = vrot.slane %v2088_v50, %v2538_v15 }
 0x2af   : > { %v1683_v16 = vadd.f32 %v1667_v37, %v1523_v59  ;;  %v552_v35 = vmul.f32 %v533_v5, %v2913_v33 }
 0x2b0   : > { %v1576_v57 = vpop.permute.xlu0 %1575  ;;  %v720_v27 = vadd.f32 %v704_v30, %v560_v34 }
 0x2b1   : > { %v1699_v29 = vmax.f32 %v1683_v16, 0.0  ;;  %v628_v3 = vpop.permute.xlu1 %627  ;;  %v1669_v36 = vmul.f32 %v1641_v11, %v1576_v57  ;;  %v1301_v11 = vrot.slane %v2988_v17, %v2552_v24  ;;  %v568_v63 = vadd.f32 %v2088_v50, %v552_v35 }
 0x2b2   : > { %v880_v37 = vadd.f32 %v864_v60, %v720_v27  ;;  %v712_v44 = vmul.f32 %v693_v61, %v628_v3  ;;  %v1504_v3 = vmul.f32 %v1461_v2, %v2960_v9  ;;  %v1192_v9 = vmul.f32 %v1173_v7, %v2942_v48 }
 0x2b3   : > { %1715 = vst.msk [vmem:[%s2591_s16 + $0x48] sm:$0xff] %vm184_vm0, %v1699_v29  ;;  %v1685_v38 = vadd.f32 %v1669_v36, %v2723_v22  ;;  %v1621_v36 = vrot.slane %v2988_v17, %v2569_v45 }
 0x2b4   : > { %v1584_v43 = vpop.permute.xlu0 %1583  ;;  %v728_v33 = vadd.f32 %v712_v44, %v568_v63 }
 0x2b5   : > { %v1701_v39 = vmax.f32 %v1685_v38, 0.0  ;;  %v1671_v58 = vmul.f32 %v1649_v26, %v1584_v43  ;;  %v2089_v43 = vld [vmem:[%s2327_s6 + $0x50] sm:$0xff]  ;;  %s2126_s6 = scalar_lea.vmem %s2125_s5, 4096 }
 0x2b6   : > { %v916_v4 = vpop.permute.xlu1 %915  ;;  %p2128_p10 = scmp.lt.s32.totalorder %s2126_s6, %s2120_s29 }
 0x2b7   : > { %1717 = vst.msk [vmem:[%s2591_s16 + $0x58] sm:$0xff] %vm184_vm0, %v1701_v39  ;;  %v1687_v22 = vadd.f32 %v1671_v58, %v2862_v23  ;;  %v1024_v59 = vmul.f32 %v981_v32, %v916_v4  ;;  %v1141_v23 = vrot.slane %v2988_v17, %v2542_v18  ;;  %v1493_v58 = vrot.slane %v2088_v50, %v2559_v28 }
 0x2b8   : > { %v1592_v12 = vpop.permute.xlu0 %1591  ;;  %p2129_p0 = por %p2128_p10, %p2127_p8 }
 0x2b9   : > { %v1703_v40 = vmax.f32 %v1687_v22, 0.0  ;;  %v1673_v56 = vmul.f32 %v1657_v53, %v1592_v12  ;;  %v1040_v47 = vadd.f32 %v1024_v59, %v880_v37  ;;  %v1184_v49 = vmul.f32 %v1141_v23, %v2933_v55 }
 0x2ba   : > { %v948_v41 = vpop.permute.xlu1 %947  ;;  %v872_v55 = vmul.f32 %v853_v51, %v2921_v8  ;;  %v1637_v53 = vrot.slane %v2089_v43, %v2569_v45  ;;  %v1645_v8 = vrot.slane %v2858_v21, %v2569_v45  ;;  %v1653_v21 = vrot.slane %v2088_v50, %v2569_v45  ;;  %p2130_p2 = pnand %p2129_p0, %p2123_p13 }
 0x2bb   : > { %1719 = vst.msk [vmem:[%s2591_s16 + $0x68] sm:$0xff] %vm184_vm0, %v1703_v40  ;;  %v1689_v14 = vadd.f32 %v1673_v56, %v1529_v6  ;;  %v1200_v57 = vadd.f32 %v1184_v49, %v1040_v47  ;;  %v1032_v26 = vmul.f32 %v1013_v52, %v948_v41  ;;  %v1512_v48 = vmul.f32 %v1493_v58, %v2972_v25 }
 0x2bc   : > { %v888_v38 = vadd.f32 %v872_v55, %v728_v33 }
 0x2bd   : > { %v1705_v20 = vmax.f32 %v1689_v14, 0.0 }
 0x2be   : > { %v1048_v19 = vadd.f32 %v1032_v26, %v888_v38 }
 0x2bf   : > { %1721 = vst.msk [vmem:[%s2591_s16 + $0x78] sm:$0xff] %vm184_vm0, %v1705_v20  ;;  %v1236_v0 = vpop.permute.xlu1 %1235 }
 0x2c0   : > { %v1344_v16 = vmul.f32 %v1301_v11, %v1236_v0  ;;  %v1208_v1 = vadd.f32 %v1192_v9, %v1048_v19 }
 0x2c2   : > { %v1360_v29 = vadd.f32 %v1344_v16, %v1200_v57 }
 0x2c3   : > { %v1268_v42 = vpop.permute.xlu1 %1267 }
 0x2c4   : > { %v1520_v15 = vadd.f32 %v1504_v3, %v1360_v29  ;;  %v1352_v18 = vmul.f32 %v1333_v13, %v1268_v42 }
 0x2c6   : > { %v1368_v46 = vadd.f32 %v1352_v18, %v1208_v1 }
 0x2c8   : > { %v1556_v54 = vpop.permute.xlu1 %1555  ;;  %v1528_v27 = vadd.f32 %v1512_v48, %v1368_v46 }
 0x2c9   : > { %v1664_v31 = vmul.f32 %v1621_v36, %v1556_v54 }
 0x2cb   : > { %v1680_v30 = vadd.f32 %v1664_v31, %v1520_v15 }
 0x2cc   : > { %v1572_v17 = vpop.permute.xlu1 %1571 }
 0x2cd   : > { %v1696_v39 = vmax.f32 %v1680_v30, 0.0  ;;  %v1668_v24 = vmul.f32 %v1637_v53, %v1572_v17 }
 0x2cf   : > { %1712 = vst.msk [vmem:[%s2591_s16 + $0x30] sm:$0xff] %vm184_vm0, %v1696_v39  ;;  %v1684_v4 = vadd.f32 %v1668_v24, %v2798_v10 }
 0x2d0   : > { %v1580_v34 = vpop.permute.xlu1 %1579 }
 0x2d1   : > { %v1700_v22 = vmax.f32 %v1684_v4, 0.0  ;;  %v1670_v32 = vmul.f32 %v1645_v8, %v1580_v34 }
 0x2d3   : > { %1716 = vst.msk [vmem:[%s2591_s16 + $0x50] sm:$0xff] %vm184_vm0, %v1700_v22  ;;  %v1686_v28 = vadd.f32 %v1670_v32, %v2907_v62 }
 0x2d4   : > { %v1588_v12 = vpop.permute.xlu1 %1587 }
 0x2d5   : > { %v1702_v6 = vmax.f32 %v1686_v28, 0.0  ;;  %v1672_v40 = vmul.f32 %v1653_v21, %v1588_v12 }
 0x2d7   : > { %1718 = vst.msk [vmem:[%s2591_s16 + $0x60] sm:$0xff] %vm184_vm0, %v1702_v6  ;;  %v1688_v10 = vadd.f32 %v1672_v40, %v1528_v27 }
 0x2d9   : > { %v1704_v45 = vmax.f32 %v1688_v10, 0.0 }
 0x2db   : > { %1720 = vst.msk [vmem:[%s2591_s16 + $0x70] sm:$0xff] %vm184_vm0, %v1704_v45 }
 0x2dc   : > { %2133 = shalt.err (!%p2130_p2)
}
 0x2dd   : > { %s2134_s28 = scalar_lea.hbm %s3060_s25, 2048  ;;  %s2138_s4 = scalar_lea.hbm %s3110_s2, 4096 }
 0x2de   : > { %p2135_p4 = scmp.ne.s32.totalorder %s3060_s25, %s2134_s28  ;;  %p2139_p9 = scmp.lt.u32.totalorder %s3060_s25, %s3110_s2 }
 0x2df   : > { %p2140_p1 = scmp.lt.u32.totalorder %s2138_s4, %s2134_s28  ;;  %p2142_p6 = scmp.lt.u32.totalorder %s2134_s28, %s3060_s25 }
 0x2e0   : > { %p2136_p5 = pnand %p2135_p4, %p3117_p11 }
 0x2e1   : > { %p2141_p3 = por %p2140_p1, %p2139_p9 }
 0x2e2   : > { %p2137_p7 = pneg %p2136_p5 }
 0x2e3   : > { %p2143_p12 = por %p2142_p6, %p2141_p3 }
 0x2e5   : > { %p2144_p13 = pnand %p2143_p12, %p2137_p7 }
 0x2e7   : > { %2147 = shalt.err (!%p2144_p13)
}
 0x2e8   : > { %s2200_s14 = smov 128   ;;  %s2201_s20 = smov 8  }
 0x2e9   : > { %1907 = dma.vmem_to_hbm [thread:$0]  (%p3117_p11), %s3062_s19, 2048, %s3060_s25, %s1723_s26, %s2200_s14, %s2200_s14, %s2201_s20  }
 0x2ea PF: > { %s1751_s16 = sand.u32 1, %s2174_s9   ;;  %p3118_p8 = scmp.ne.s32.totalorder %s3115_s22, 0 }
 0x2eb   : > { %p3119_p10 = scmp.ge.s32.totalorder %s2186_s12, 2  ;;  %s1752_s17 = scalar_lea.sflag [#allocation4], %s1751_s16 }
 0x2ed   : > { %p1914_p0 = pnand %p3119_p10, %p3118_p8 }
 0x2ef   : > { %2169 = dma.done.wait (!%p1914_p0), %s1752_s17, 2048  }
 0x2f0   : > { %2171 = vsyncadd (!%p1914_p0), %s1752_s17, 4294965248  ;;  %p15_p2 = scmp.ge.s32.totalorder %s2242_s15, 4   ;;  %s3120_s9 = smov %s2178_s10 }
 0x2f1   : > { %s3121_s10 = smov %s2182_s11  ;;  %s3122_s11 = smov %s2254_s18 }
 0x2f2   : > { %s3123_s12 = smov %s2242_s15  ;;  %17 = sbr.rel (!%p15_p2) target bundleno = 5 (0x5), region = 73 }
 0x2f9   :  { %1757 = vsyncpa [#allocation3], 1 }
 0x2fa   :  { %1759 = vsyncpa [#allocation3 + $0x1], 1 }
 0x2fb   :  { %1760 = vsyncpa [#allocation4], 1 }
 0x2fc   :  { %1762 = vsyncpa [#allocation4 + $0x1], 1 }

</bundles_post_ra>
